<compile_context>
chip_gen: v7x
topology: tpu7x:2x2x1
jax: 0.10.0
libtpu: 0.0.40
codegen_flags: <defaults>
</compile_context>

<pallas_src>
import functools

import jax
import jax.numpy as jnp
import numpy as np
from jax import lax
from jax.experimental import pallas as pl
from jax.experimental.pallas import tpu as pltpu

NEG_INF = -1e9


def _round_up(x, m):
    return ((x + m - 1) // m) * m


def _tile_bytes(shape, dtype):
    """VMEM footprint estimate of a (..., R, C) array with (8,128) tiling."""
    r = _round_up(int(shape[-2]), 8)
    c = _round_up(int(shape[-1]), 128)
    lead = 1
    for s in shape[:-2]:
        lead *= int(s)
    return lead * r * c * jnp.dtype(dtype).itemsize


def _vmem_budget_bytes():
    cap = 64 * 1024 * 1024                     # conservative default (v7x per-core VMEM)
    try:
        cap = int(pltpu.get_tpu_info().vmem_capacity_bytes)
    except Exception:
        pass
    return int(max(32 * 1024 * 1024, min(cap * 2 // 3, 96 * 1024 * 1024)))


def multi_head_qkv_ref(qkv, head_num):
    b, n, d = qkv.shape
    return qkv.reshape(b, n, head_num, d // head_num).transpose(0, 2, 1, 3)


# --------------------------------------------------------------------------- kernel
def decoder_kernel(x_ref, wq_ref, wc_ref, bc_ref,
                   k_n_ref, v_n_ref, k_p_ref, k_d_ref, nk_ref,
                   mask_n_ref, mask_p_ref, mask_d_ref,
                   prob_ref,
                   q_sc, att_sc, score_sc, *,
                   block_b, mt8, head_num, qkv_dim, embedding_dim,
                   n_pad, p_pad, d_pad, clip):
    H, QKV = head_num, qkv_dim
    HQ = H * QKV
    inv_sqrt_qkv = 1.0 / float(np.sqrt(QKV))
    inv_sqrt_e = 1.0 / float(np.sqrt(embedding_dim))

    # Phase 1: fused query projection -- ONE MXU matmul for all block_b*mt8 rows.
    q_sc[...] = jnp.dot(x_ref[...].astype(jnp.float32),
                        wq_ref[...].astype(jnp.float32),
                        preferred_element_type=jnp.float32)          # (rows, 3*HQ)

    # Per-head row/column selection masks (grid-step invariant, hoisted out of loops).
    row_ids = lax.broadcasted_iota(jnp.int32, (HQ, 1), 0)
    col_ids = lax.broadcasted_iota(jnp.int32, (1, HQ), 1)
    row_sel = [(row_ids >= h * QKV) & (row_ids < (h + 1) * QKV) for h in range(H)]
    col_sel = [(col_ids >= h * QKV) & (col_ids < (h + 1) * QKV) for h in range(H)]

    # Phase 2: per-batch-element multi-head attention (fori bounds vreg live ranges).
    def attn_body(b, carry):
        r0 = pl.multiple_of(b * mt8, mt8)
        q_b = q_sc[pl.ds(r0, mt8), :]                                # (mt8, 3*HQ) f32
        q_n = q_b[:, 0:HQ]
        q_p = q_b[:, HQ:2 * HQ]
        q_d = q_b[:, 2 * HQ:3 * HQ]
        k_n_b = k_n_ref[b].astype(jnp.float32)                       # (HQ, n_pad)
        v_b = v_n_ref[b].astype(jnp.float32)                         # (n_pad, HQ)
        k_p_b = k_p_ref[b].astype(jnp.float32)                       # (HQ, p_pad)
        k_d_b = k_d_ref[b].astype(jnp.float32)                       # (HQ, d_pad)
        m_n = mask_n_ref[b]                                          # (mt8, n_pad)
        m_p = mask_p_ref[b]                                          # (mt8, p_pad)
        m_d = mask_d_ref[b]                                          # (mt8, d_pad)

        out_acc = jnp.zeros((mt8, HQ), jnp.float32)
        for h in range(H):                                           # small static unroll
            # Per-head scores via row-masked keys (keeps full-width, proven-to-lower ops;
            # same number of MXU passes as sliced K since the contraction dim <= HQ).
            kh_n = jnp.where(row_sel[h], k_n_b, 0.0)
            kh_p = jnp.where(row_sel[h], k_p_b, 0.0)
            kh_d = jnp.where(row_sel[h], k_d_b, 0.0)
            s_n = jnp.dot(q_n, kh_n, preferred_element_type=jnp.float32) * inv_sqrt_qkv + m_n
            s_p = jnp.dot(q_p, kh_p, preferred_element_type=jnp.float32) * inv_sqrt_qkv + m_p
            s_d = jnp.dot(q_d, kh_d, preferred_element_type=jnp.float32) * inv_sqrt_qkv + m_d

            # Softmax over the concatenated [node | pick | delivery] segment.
            m = jnp.maximum(jnp.max(s_n, axis=-1, keepdims=True),
                            jnp.maximum(jnp.max(s_p, axis=-1, keepdims=True),
                                        jnp.max(s_d, axis=-1, keepdims=True)))
            e_n = jnp.exp(s_n - m)
            e_p = jnp.exp(s_p - m)
            e_d = jnp.exp(s_d - m)
            denom = (jnp.sum(e_n, axis=-1, keepdims=True)
                     + jnp.sum(e_p, axis=-1, keepdims=True)
                     + jnp.sum(e_d, axis=-1, keepdims=True))
            w_n = e_n / denom                                        # exact divide

            out_full = jnp.dot(w_n, v_b, preferred_element_type=jnp.float32)  # (mt8, HQ)
            out_acc = out_acc + jnp.where(col_sel[h], out_full, 0.0)
        att_sc[pl.ds(r0, mt8), :] = out_acc
        return carry

    lax.fori_loop(0, block_b, attn_body, 0)

    # Phase 3: ONE combine matmul for the whole batch block + single b_comb broadcast.
    score_sc[...] = (jnp.dot(att_sc[...], wc_ref[...],
                             preferred_element_type=jnp.float32) + bc_ref[...])

    # Phase 4: node-key scoring + final softmax (exact), 8-row aligned lane-dense stores.
    def prob_body(b, carry):
        r0 = pl.multiple_of(b * mt8, mt8)
        nk_b = nk_ref[b].astype(jnp.float32)                         # (E, n_pad)
        s_mm = jnp.dot(score_sc[pl.ds(r0, mt8), :], nk_b,
                       preferred_element_type=jnp.float32)           # (mt8, n_pad)
        logits = clip * jnp.tanh(s_mm * inv_sqrt_e) + mask_n_ref[b]
        logits = logits - jnp.max(logits, axis=-1, keepdims=True)
        e = jnp.exp(logits)
        prob_ref[pl.ds(r0, mt8), :] = e / jnp.sum(e, axis=-1, keepdims=True)
        return carry

    lax.fori_loop(0, block_b, prob_body, 0)


# --------------------------------------------------------------------- setup (set_k_v)
def set_k_v(params, encoded_node, customer_size, head_num, mt_size, *,
            block_batch=None, storage_dtype=jnp.float32):
    """PyTorch Decoder.set_k_v + one-time kernel layout planning (plain-JAX glue).

    Builds the dense (per-head-stacked) K_n / V_n / K_p / K_d / node_key, the fused
    query weight, pads the batch ONCE to the chosen batch block, and records the plan.
    """
    B, N, E = encoded_node.shape
    H = head_num
    HQ = params['Wk_n'].shape[1]
    QKV = HQ // H
    pick = customer_size
    delivery = N - 1 - pick
    n_pad = _round_up(N, 128)
    p_pad = _round_up(max(pick, 1), 128)
    d_pad = _round_up(max(delivery, 1), 128)
    mt8 = _round_up(mt_size, 8)
    sd = storage_dtype
    f32 = jnp.float32

    # ---- batch-block selection: ~256 MXU rows, VMEM budget, >=2 grid steps. ----
    budget = _vmem_budget_bytes()
    per_b_in = (_tile_bytes((HQ, n_pad), sd) + _tile_bytes((n_pad, HQ), sd)
                + _tile_bytes((HQ, p_pad), sd) + _tile_bytes((HQ, d_pad), sd)
                + _tile_bytes((E, n_pad), sd) + _tile_bytes((mt8, E), sd)
                + _tile_bytes((mt8, n_pad), f32) + _tile_bytes((mt8, p_pad), f32)
                + _tile_bytes((mt8, d_pad), f32))
    per_b_out = _tile_bytes((mt8, n_pad), f32)
    per_b_scr = (_tile_bytes((mt8, 3 * HQ), f32) + _tile_bytes((mt8, HQ), f32)
                 + _tile_bytes((mt8, E), f32))
    fixed = 2 * (_tile_bytes((E, 3 * HQ), sd) + _tile_bytes((HQ, E), f32)
                 + _tile_bytes((1, E), f32))
    bb_vmem = max(1, (budget - fixed) // (2 * (per_b_in + per_b_out) + per_b_scr))

    if block_batch is None:
        bb = min(pl.cdiv(256, mt8), bb_vmem)      # ~256 MXU rows for the fused projection
        if B > 1:
            bb = min(bb, pl.cdiv(B, 2))           # >=2 grid steps (keep both v7x TCs busy)
        bb = max(1, min(bb, B))
    else:
        bb = max(1, min(int(block_batch), int(bb_vmem)))
    b_pad = _round_up(B, bb)

    # ---- persistent tensors (padded to b_pad ONCE, stored in `storage_dtype`). ----
    pick_emb = encoded_node[:, 1:1 + pick, :]
    del_emb = encoded_node[:, 1 + pick:, :]

    def pad_b_lane(x, lane_pad):
        return jnp.pad(x, ((0, b_pad - B), (0, 0), (0, lane_pad - x.shape[2])))

    k_n = jnp.swapaxes(encoded_node @ params['Wk_n'], 1, 2)          # (B, HQ, N)
    v_n = encoded_node @ params['Wv_n']                              # (B, N, HQ)
    k_p = jnp.swapaxes(pick_emb @ params['Wk_p'], 1, 2)              # (B, HQ, pick)
    k_d = jnp.swapaxes(del_emb @ params['Wk_d'], 1, 2)               # (B, HQ, delivery)
    node_key = jnp.swapaxes(encoded_node, 1, 2)                      # (B, E, N)

    kv = dict(
        k_n=pad_b_lane(k_n, n_pad).astype(sd),
        v_n=jnp.pad(v_n, ((0, b_pad - B), (0, n_pad - N), (0, 0))).astype(sd),
        k_p=pad_b_lane(k_p, p_pad).astype(sd),
        k_d=pad_b_lane(k_d, d_pad).astype(sd),
        node_key=pad_b_lane(node_key, n_pad).astype(sd),
        Wq_all=jnp.concatenate([params['Wq_n'], params['Wq_p'], params['Wq_d']],
                               axis=1).astype(sd),                   # (E, 3*HQ)
        W_comb=params['W_comb'].astype(f32),
        b_comb=params['b_comb'].astype(f32),
        encoded_node=encoded_node,
        head_num=H, qkv_dim=QKV, embedding_dim=E,
        pick=pick, delivery=delivery, n=N,
        n_pad=n_pad, p_pad=p_pad, d_pad=d_pad,
        mt=mt_size, mt8=mt8, bb=int(bb), b=B, b_pad=int(b_pad),
        storage_dtype=sd, vmem_limit=int(budget),
    )
    return kv


# ------------------------------------------------------------------------- forward
def decoder_forward(kv, current_node, mask, *, clip):
    B, MT = current_node.shape
    assert B == kv['b'] and MT == kv['mt']
    E, H, QKV = kv['embedding_dim'], kv['head_num'], kv['qkv_dim']
    HQ = H * QKV
    N, n_pad, p_pad, d_pad = kv['n'], kv['n_pad'], kv['p_pad'], kv['d_pad']
    pick, delivery = kv['pick'], kv['delivery']
    mt8, bb, b_pad = kv['mt8'], kv['bb'], kv['b_pad']
    sd = kv['storage_dtype']

    # get_encoding: gather the currently-picked node embeddings (plain-JAX glue).
    q_emb = jnp.take_along_axis(kv['encoded_node'], current_node[:, :, None], axis=1)
    x = jnp.pad(q_emb, ((0, b_pad - B), (0, mt8 - MT), (0, 0)))
    x = x.reshape(b_pad * mt8, E).astype(sd)

    # Base (untiled) masks only; every padded slot carries -1e9 (exp -> 0 / discarded).
    mask = mask.astype(jnp.float32)
    mask_n = jnp.pad(mask, ((0, b_pad - B), (0, mt8 - MT), (0, n_pad - N)),
                     constant_values=NEG_INF)
    mask_p = jnp.pad(mask[:, :, 1:1 + pick],
                     ((0, b_pad - B), (0, mt8 - MT), (0, p_pad - pick)),
                     constant_values=NEG_INF)
    mask_d = jnp.pad(mask[:, :, 1 + pick:],
                     ((0, b_pad - B), (0, mt8 - MT), (0, d_pad - delivery)),
                     constant_values=NEG_INF)

    rows = bb * mt8
    kernel = functools.partial(
        decoder_kernel, block_b=bb, mt8=mt8, head_num=H, qkv_dim=QKV,
        embedding_dim=E, n_pad=n_pad, p_pad=p_pad, d_pad=d_pad, clip=float(clip))

    in_specs = [
        pl.BlockSpec((rows, E), lambda g: (g, 0)),                 # query rows
        pl.BlockSpec((E, 3 * HQ), lambda g: (0, 0)),               # fused Wq
        pl.BlockSpec((HQ, E), lambda g: (0, 0)),                   # W_comb
        pl.BlockSpec((1, E), lambda g: (0, 0)),                    # b_comb
        pl.BlockSpec((bb, HQ, n_pad), lambda g: (g, 0, 0)),        # K_n (dense)
        pl.BlockSpec((bb, n_pad, HQ), lambda g: (g, 0, 0)),        # V_n (dense)
        pl.BlockSpec((bb, HQ, p_pad), lambda g: (g, 0, 0)),        # K_p (dense)
        pl.BlockSpec((bb, HQ, d_pad), lambda g: (g, 0, 0)),        # K_d (dense)
        pl.BlockSpec((bb, E, n_pad), lambda g: (g, 0, 0)),         # node_key
        pl.BlockSpec((bb, mt8, n_pad), lambda g: (g, 0, 0)),       # mask (node)
        pl.BlockSpec((bb, mt8, p_pad), lambda g: (g, 0, 0)),       # mask (pick)
        pl.BlockSpec((bb, mt8, d_pad), lambda g: (g, 0, 0)),       # mask (delivery)
    ]
    out_spec = pl.BlockSpec((rows, n_pad), lambda g: (g, 0))

    prob_pad = pl.pallas_call(
        kernel,
        out_shape=jax.ShapeDtypeStruct((b_pad * mt8, n_pad), jnp.float32),
        grid_spec=pltpu.PrefetchScalarGridSpec(
            num_scalar_prefetch=0, grid=(b_pad // bb,),
            in_specs=in_specs, out_specs=out_spec,
            scratch_shapes=[pltpu.VMEM((rows, 3 * HQ), jnp.float32),   # fused queries
                            pltpu.VMEM((rows, HQ), jnp.float32),       # attention outs
                            pltpu.VMEM((rows, E), jnp.float32)]),      # combined scores
        compiler_params=pltpu.CompilerParams(
            dimension_semantics=("parallel",),
            vmem_limit_bytes=kv['vmem_limit']),
    )(x, kv['Wq_all'], kv['W_comb'], kv['b_comb'],
      kv['k_n'], kv['v_n'], kv['k_p'], kv['k_d'], kv['node_key'],
      mask_n, mask_p, mask_d)

    return prob_pad.reshape(b_pad, mt8, n_pad)[:B, :MT, :N]


# ----------------------------------------------------------------------- reference
def decoder_ref(params, encoded_node, current_node, mask, *,
                head_num, qkv_dim, embedding_dim, clip, pick,
                storage_dtype=jnp.float32):
    """Pure-JAX reference mirroring the PyTorch forward; `storage_dtype` mirrors the
    kernel's HBM storage precision (math stays f32)."""
    H = head_num

    def q(x):
        return x.astype(storage_dtype).astype(jnp.float32)

    q_emb = jnp.take_along_axis(encoded_node, current_node[:, :, None], axis=1)
    pick_emb = encoded_node[:, 1:1 + pick, :]
    del_emb = encoded_node[:, 1 + pick:, :]
    k_n = multi_head_qkv_ref(q(encoded_node @ params['Wk_n']), H)
    v_n = multi_head_qkv_ref(q(encoded_node @ params['Wv_n']), H)
    k_p = multi_head_qkv_ref(q(pick_emb @ params['Wk_p']), H)
    k_d = multi_head_qkv_ref(q(del_emb @ params['Wk_d']), H)
    q_in = q(q_emb)
    q_n = multi_head_qkv_ref(q_in @ q(params['Wq_n']), H)
    q_p = multi_head_qkv_ref(q_in @ q(params['Wq_p']), H)
    q_d = multi_head_qkv_ref(q_in @ q(params['Wq_d']), H)
    s = jnp.sqrt(jnp.float32(qkv_dim))
    s_n = jnp.einsum('bhmd,bhnd->bhmn', q_n, k_n) / s + mask[:, None]
    s_p = jnp.einsum('bhmd,bhnd->bhmn', q_p, k_p) / s + mask[:, None, :, 1:1 + pick]
    s_d = jnp.einsum('bhmd,bhnd->bhmn', q_d, k_d) / s + mask[:, None, :, 1 + pick:]
    w = jax.nn.softmax(jnp.concatenate([s_n, s_p, s_d], axis=-1), axis=-1)
    N = encoded_node.shape[1]
    out = jnp.einsum('bhmn,bhnd->bhmd', w[..., :N], v_n)
    B, H_, MT, D = out.shape
    out_concat = out.transpose(0, 2, 1, 3).reshape(B, MT, H_ * D)
    score = out_concat @ params['W_comb'] + params['b_comb']
    score_mm = jnp.einsum('bme,ben->bmn', score, jnp.swapaxes(q(encoded_node), 1, 2))
    masked = clip * jnp.tanh(score_mm / jnp.sqrt(jnp.float32(embedding_dim))) + mask
    return jax.nn.softmax(masked, axis=2)


# --------------------------------------------------------------------------- test
def _make_params(key, E, H, QKV):
    keys = jax.random.split(key, 9)
    HQ = H * QKV

    def linear_w(k, shape, fan_in):
        bound = 1.0 / np.sqrt(fan_in)
        return jax.random.uniform(k, shape, jnp.float32, -bound, bound)

    return {
        'Wq_n': linear_w(keys[0], (E, HQ), E),
        'Wk_n': linear_w(keys[1], (E, HQ), E),
        'Wv_n': linear_w(keys[2], (E, HQ), E),
        'Wq_p': linear_w(keys[3], (E, HQ), E),
        'Wk_p': linear_w(keys[4], (E, HQ), E),
        'Wq_d': linear_w(keys[5], (E, HQ), E),
        'Wk_d': linear_w(keys[6], (E, HQ), E),
        'W_comb': linear_w(keys[7], (HQ, E), HQ),
        'b_comb': linear_w(keys[8], (1, E), HQ),
    }


def _run_case(seed, B, C, MT, E, H, QKV, clip, block_batch, storage_dtype):
    N = 1 + 2 * C
    kp, ke, kc, km = jax.random.split(jax.random.PRNGKey(seed), 4)
    params = _make_params(kp, E, H, QKV)
    encoded_node = jax.random.normal(ke, (B, N, E), jnp.float32)
    current_node = jax.random.randint(kc, (B, MT), 0, N, dtype=jnp.int32)
    mask = jnp.where(jax.random.uniform(km, (B, MT, N)) < 0.3, NEG_INF, 0.0)
    mask = mask.at[:, :, 0].set(0.0).astype(jnp.float32)   # always >=1 feasible node

    kv = set_k_v(params, encoded_node, C, H, MT,
                 block_batch=block_batch, storage_dtype=storage_dtype)
    prob = decoder_forward(kv, current_node, mask, clip=clip)
    prob = jax.block_until_ready(prob)

    ref = decoder_ref(params, encoded_node, current_node, mask,
                      head_num=H, qkv_dim=QKV, embedding_dim=E,
                      clip=clip, pick=C, storage_dtype=storage_dtype)
    np.testing.assert_allclose(np.asarray(prob), np.asarray(ref),
                               rtol=2e-3, atol=1e-5)


if __name__ == "__main__":
    # Case 1: f32 storage, auto batch-block selection (>=2 grid steps).
    _run_case(seed=0, B=8, C=3, MT=4, E=32, H=4, QKV=8, clip=10.0,
              block_batch=None, storage_dtype=jnp.float32)
    # Case 2: explicit batch block with batch padding (B=6 -> padded to 8, 2 grid steps).
    _run_case(seed=1, B=6, C=5, MT=4, E=32, H=4, QKV=8, clip=10.0,
              block_batch=4, storage_dtype=jnp.float32)
    # Case 3: bf16 HBM storage for K/V/node_key/queries (halved DMA bytes); the
    # reference applies the same quantization so the comparison stays tight.
    _run_case(seed=2, B=5, C=4, MT=3, E=32, H=4, QKV=8, clip=10.0,
              block_batch=None, storage_dtype=jnp.bfloat16)
    print("KERNEL_OK")
</pallas_src>

<mosaic_0001>
module attributes {stable_mosaic.version = 11 : i64} {
  func.func @decoder_kernel(%arg0: i32, %arg1: memref<32x32xf32, #tpu.memory_space<vmem>>, %arg2: memref<32x96xf32, #tpu.memory_space<vmem>>, %arg3: memref<32x32xf32, #tpu.memory_space<vmem>>, %arg4: memref<1x32xf32, #tpu.memory_space<vmem>>, %arg5: memref<4x32x128xf32, #tpu.memory_space<vmem>>, %arg6: memref<4x128x32xf32, #tpu.memory_space<vmem>>, %arg7: memref<4x32x128xf32, #tpu.memory_space<vmem>>, %arg8: memref<4x32x128xf32, #tpu.memory_space<vmem>>, %arg9: memref<4x32x128xf32, #tpu.memory_space<vmem>>, %arg10: memref<4x8x128xf32, #tpu.memory_space<vmem>>, %arg11: memref<4x8x128xf32, #tpu.memory_space<vmem>>, %arg12: memref<4x8x128xf32, #tpu.memory_space<vmem>>, %arg13: memref<32x128xf32, #tpu.memory_space<vmem>>, %arg14: memref<32x96xf32, #tpu.memory_space<vmem>>, %arg15: memref<32x32xf32, #tpu.memory_space<vmem>>, %arg16: memref<32x32xf32, #tpu.memory_space<vmem>>) attributes {dimension_semantics = [#tpu.dimension_semantics<parallel>], iteration_bounds = array<i64: 2>, scalar_prefetch = 0 : i64, scratch_operands = 3 : i64, tpu.core_type = #tpu.core_type<tc>, window_params = [{transform_indices = @transform_0, window_bounds = array<i64: 32, 32>}, {pipeline_mode = #tpu.pipeline_mode<synchronous>, transform_indices = @transform_1, window_bounds = array<i64: 32, 96>}, {pipeline_mode = #tpu.pipeline_mode<synchronous>, transform_indices = @transform_2, window_bounds = array<i64: 32, 32>}, {pipeline_mode = #tpu.pipeline_mode<synchronous>, transform_indices = @transform_3, window_bounds = array<i64: 1, 32>}, {transform_indices = @transform_4, window_bounds = array<i64: 4, 32, 128>}, {transform_indices = @transform_5, window_bounds = array<i64: 4, 128, 32>}, {transform_indices = @transform_6, window_bounds = array<i64: 4, 32, 128>}, {transform_indices = @transform_7, window_bounds = array<i64: 4, 32, 128>}, {transform_indices = @transform_8, window_bounds = array<i64: 4, 32, 128>}, {transform_indices = @transform_9, window_bounds = array<i64: 4, 8, 128>}, {transform_indices = @transform_10, window_bounds = array<i64: 4, 8, 128>}, {transform_indices = @transform_11, window_bounds = array<i64: 4, 8, 128>}, {transform_indices = @transform_12, window_bounds = array<i64: 32, 128>}]} {
    %c0 = arith.constant 0 : index
    %c0_0 = arith.constant 0 : index
    %0 = vector.load %arg1[%c0, %c0_0] : memref<32x32xf32, #tpu.memory_space<vmem>>, vector<32x32xf32>
    %c0_1 = arith.constant 0 : index
    %c0_2 = arith.constant 0 : index
    %1 = vector.load %arg2[%c0_1, %c0_2] : memref<32x96xf32, #tpu.memory_space<vmem>>, vector<32x96xf32>
    %cst = arith.constant dense<0.000000e+00> : vector<32x96xf32>
    %2 = tpu.matmul %0, %1, %cst {dimension_numbers = #tpu.dot_dimension_numbers<[1], [0], [0], [1], [0, 0, 1, 1], [], []>} : vector<32x32xf32>, vector<32x96xf32>, vector<32x96xf32> -> vector<32x96xf32>
    %c0_3 = arith.constant 0 : index
    %c0_4 = arith.constant 0 : index
    %3 = vector.load %arg14[%c0_3, %c0_4] : memref<32x96xf32, #tpu.memory_space<vmem>>, vector<32x96xf32>
    tpu.vector_store %arg14[%c0_3, %c0_4], %2 {strides = array<i32>} : memref<32x96xf32, #tpu.memory_space<vmem>>, vector<32x96xf32>,
    %4 = tpu.iota {dimensions = array<i32: 0>} : vector<32x1xi32>
    %5 = tpu.iota {dimensions = array<i32: 1>} : vector<1x32xi32>
    %c0_i32 = arith.constant 0 : i32
    %6 = vector.broadcast %c0_i32 : i32 to vector<32x1xi32>
    %7 = arith.cmpi sge, %4, %6 : vector<32x1xi32>
    %c8_i32 = arith.constant 8 : i32
    %8 = vector.broadcast %c8_i32 : i32 to vector<32x1xi32>
    %9 = arith.cmpi slt, %4, %8 : vector<32x1xi32>
    %10 = arith.andi %7, %9 : vector<32x1xi1>
    %c8_i32_5 = arith.constant 8 : i32
    %11 = vector.broadcast %c8_i32_5 : i32 to vector<32x1xi32>
    %12 = arith.cmpi sge, %4, %11 : vector<32x1xi32>
    %c16_i32 = arith.constant 16 : i32
    %13 = vector.broadcast %c16_i32 : i32 to vector<32x1xi32>
    %14 = arith.cmpi slt, %4, %13 : vector<32x1xi32>
    %15 = arith.andi %12, %14 : vector<32x1xi1>
    %c16_i32_6 = arith.constant 16 : i32
    %16 = vector.broadcast %c16_i32_6 : i32 to vector<32x1xi32>
    %17 = arith.cmpi sge, %4, %16 : vector<32x1xi32>
    %c24_i32 = arith.constant 24 : i32
    %18 = vector.broadcast %c24_i32 : i32 to vector<32x1xi32>
    %19 = arith.cmpi slt, %4, %18 : vector<32x1xi32>
    %20 = arith.andi %17, %19 : vector<32x1xi1>
    %c24_i32_7 = arith.constant 24 : i32
    %21 = vector.broadcast %c24_i32_7 : i32 to vector<32x1xi32>
    %22 = arith.cmpi sge, %4, %21 : vector<32x1xi32>
    %c32_i32 = arith.constant 32 : i32
    %23 = vector.broadcast %c32_i32 : i32 to vector<32x1xi32>
    %24 = arith.cmpi slt, %4, %23 : vector<32x1xi32>
    %25 = arith.andi %22, %24 : vector<32x1xi1>
    %c0_i32_8 = arith.constant 0 : i32
    %26 = vector.broadcast %c0_i32_8 : i32 to vector<1x32xi32>
    %27 = arith.cmpi sge, %5, %26 : vector<1x32xi32>
    %c8_i32_9 = arith.constant 8 : i32
    %28 = vector.broadcast %c8_i32_9 : i32 to vector<1x32xi32>
    %29 = arith.cmpi slt, %5, %28 : vector<1x32xi32>
    %30 = arith.andi %27, %29 : vector<1x32xi1>
    %c8_i32_10 = arith.constant 8 : i32
    %31 = vector.broadcast %c8_i32_10 : i32 to vector<1x32xi32>
    %32 = arith.cmpi sge, %5, %31 : vector<1x32xi32>
    %c16_i32_11 = arith.constant 16 : i32
    %33 = vector.broadcast %c16_i32_11 : i32 to vector<1x32xi32>
    %34 = arith.cmpi slt, %5, %33 : vector<1x32xi32>
    %35 = arith.andi %32, %34 : vector<1x32xi1>
    %c16_i32_12 = arith.constant 16 : i32
    %36 = vector.broadcast %c16_i32_12 : i32 to vector<1x32xi32>
    %37 = arith.cmpi sge, %5, %36 : vector<1x32xi32>
    %c24_i32_13 = arith.constant 24 : i32
    %38 = vector.broadcast %c24_i32_13 : i32 to vector<1x32xi32>
    %39 = arith.cmpi slt, %5, %38 : vector<1x32xi32>
    %40 = arith.andi %37, %39 : vector<1x32xi1>
    %c24_i32_14 = arith.constant 24 : i32
    %41 = vector.broadcast %c24_i32_14 : i32 to vector<1x32xi32>
    %42 = arith.cmpi sge, %5, %41 : vector<1x32xi32>
    %c32_i32_15 = arith.constant 32 : i32
    %43 = vector.broadcast %c32_i32_15 : i32 to vector<1x32xi32>
    %44 = arith.cmpi slt, %5, %43 : vector<1x32xi32>
    %45 = arith.andi %42, %44 : vector<1x32xi1>
    %c0_i32_16 = arith.constant 0 : i32
    %c4_i32 = arith.constant 4 : i32
    %46 = arith.addi %c0_i32_16, %c4_i32 : i32
    %c1_i32 = arith.constant 1 : i32
    scf.for %arg17 = %c0_i32_16 to %46 step %c1_i32  : i32 {
      %c8_i32_31 = arith.constant 8 : i32
      %55 = arith.muli %arg17, %c8_i32_31 : i32
      %56 = tpu.assume_multiple %55, 8 : i32
      %57 = arith.index_cast %56 : i32 to index
      %c0_32 = arith.constant 0 : index
      %58 = vector.load %arg14[%57, %c0_32] : memref<32x96xf32, #tpu.memory_space<vmem>>, vector<8x96xf32>
      %59 = vector.extract_strided_slice %58 {offsets = [0, 0], sizes = [8, 32], strides = [1, 1]} : vector<8x96xf32> to vector<8x32xf32>
      %60 = vector.extract_strided_slice %58 {offsets = [0, 32], sizes = [8, 32], strides = [1, 1]} : vector<8x96xf32> to vector<8x32xf32>
      %61 = vector.extract_strided_slice %58 {offsets = [0, 64], sizes = [8, 32], strides = [1, 1]} : vector<8x96xf32> to vector<8x32xf32>
      %62 = arith.index_cast %arg17 : i32 to index
      %c0_33 = arith.constant 0 : index
      %c0_34 = arith.constant 0 : index
      %63 = vector.load %arg5[%62, %c0_33, %c0_34] : memref<4x32x128xf32, #tpu.memory_space<vmem>>, vector<1x32x128xf32>
      %64 = vector.shape_cast %63 : vector<1x32x128xf32> to vector<32x128xf32>
      %65 = arith.index_cast %arg17 : i32 to index
      %c0_35 = arith.constant 0 : index
      %c0_36 = arith.constant 0 : index
      %66 = vector.load %arg6[%65, %c0_35, %c0_36] : memref<4x128x32xf32, #tpu.memory_space<vmem>>, vector<1x128x32xf32>
      %67 = vector.shape_cast %66 : vector<1x128x32xf32> to vector<128x32xf32>
      %68 = arith.index_cast %arg17 : i32 to index
      %c0_37 = arith.constant 0 : index
      %c0_38 = arith.constant 0 : index
      %69 = vector.load %arg7[%68, %c0_37, %c0_38] : memref<4x32x128xf32, #tpu.memory_space<vmem>>, vector<1x32x128xf32>
      %70 = vector.shape_cast %69 : vector<1x32x128xf32> to vector<32x128xf32>
      %71 = arith.index_cast %arg17 : i32 to index
      %c0_39 = arith.constant 0 : index
      %c0_40 = arith.constant 0 : index
      %72 = vector.load %arg8[%71, %c0_39, %c0_40] : memref<4x32x128xf32, #tpu.memory_space<vmem>>, vector<1x32x128xf32>
      %73 = vector.shape_cast %72 : vector<1x32x128xf32> to vector<32x128xf32>
      %74 = arith.index_cast %arg17 : i32 to index
      %c0_41 = arith.constant 0 : index
      %c0_42 = arith.constant 0 : index
      %75 = vector.load %arg10[%74, %c0_41, %c0_42] : memref<4x8x128xf32, #tpu.memory_space<vmem>>, vector<1x8x128xf32>
      %76 = vector.shape_cast %75 : vector<1x8x128xf32> to vector<8x128xf32>
      %77 = arith.index_cast %arg17 : i32 to index
      %c0_43 = arith.constant 0 : index
      %c0_44 = arith.constant 0 : index
      %78 = vector.load %arg11[%77, %c0_43, %c0_44] : memref<4x8x128xf32, #tpu.memory_space<vmem>>, vector<1x8x128xf32>
      %79 = vector.shape_cast %78 : vector<1x8x128xf32> to vector<8x128xf32>
      %80 = arith.index_cast %arg17 : i32 to index
      %c0_45 = arith.constant 0 : index
      %c0_46 = arith.constant 0 : index
      %81 = vector.load %arg12[%80, %c0_45, %c0_46] : memref<4x8x128xf32, #tpu.memory_space<vmem>>, vector<1x8x128xf32>
      %82 = vector.shape_cast %81 : vector<1x8x128xf32> to vector<8x128xf32>
      %cst_47 = arith.constant 0.000000e+00 : f32
      %83 = vector.broadcast %cst_47 : f32 to vector<8x32xf32>
      %cst_48 = arith.constant 0.000000e+00 : f32
      %84 = vector.shape_cast %10 : vector<32x1xi1> to vector<32x1xi1>
      %85 = vector.broadcast %84 : vector<32x1xi1> to vector<32x128xi1>
      %86 = vector.broadcast %cst_48 : f32 to vector<32x128xf32>
      %87 = arith.select %85, %64, %86 : vector<32x128xi1>, vector<32x128xf32>
      %cst_49 = arith.constant 0.000000e+00 : f32
      %88 = vector.shape_cast %10 : vector<32x1xi1> to vector<32x1xi1>
      %89 = vector.broadcast %88 : vector<32x1xi1> to vector<32x128xi1>
      %90 = vector.broadcast %cst_49 : f32 to vector<32x128xf32>
      %91 = arith.select %89, %70, %90 : vector<32x128xi1>, vector<32x128xf32>
      %cst_50 = arith.constant 0.000000e+00 : f32
      %92 = vector.shape_cast %10 : vector<32x1xi1> to vector<32x1xi1>
      %93 = vector.broadcast %92 : vector<32x1xi1> to vector<32x128xi1>
      %94 = vector.broadcast %cst_50 : f32 to vector<32x128xf32>
      %95 = arith.select %93, %73, %94 : vector<32x128xi1>, vector<32x128xf32>
      %cst_51 = arith.constant dense<0.000000e+00> : vector<8x128xf32>
      %96 = tpu.matmul %59, %87, %cst_51 {dimension_numbers = #tpu.dot_dimension_numbers<[1], [0], [0], [1], [0, 0, 1, 1], [], []>} : vector<8x32xf32>, vector<32x128xf32>, vector<8x128xf32> -> vector<8x128xf32>
      %cst_52 = arith.constant 0.353553385 : f32
      %97 = vector.broadcast %cst_52 : f32 to vector<8x128xf32>
      %98 = arith.mulf %96, %97 : vector<8x128xf32>
      %99 = arith.addf %98, %76 : vector<8x128xf32>
      %cst_53 = arith.constant dense<0.000000e+00> : vector<8x128xf32>
      %100 = tpu.matmul %60, %91, %cst_53 {dimension_numbers = #tpu.dot_dimension_numbers<[1], [0], [0], [1], [0, 0, 1, 1], [], []>} : vector<8x32xf32>, vector<32x128xf32>, vector<8x128xf32> -> vector<8x128xf32>
      %cst_54 = arith.constant 0.353553385 : f32
      %101 = vector.broadcast %cst_54 : f32 to vector<8x128xf32>
      %102 = arith.mulf %100, %101 : vector<8x128xf32>
      %103 = arith.addf %102, %79 : vector<8x128xf32>
      %cst_55 = arith.constant dense<0.000000e+00> : vector<8x128xf32>
      %104 = tpu.matmul %61, %95, %cst_55 {dimension_numbers = #tpu.dot_dimension_numbers<[1], [0], [0], [1], [0, 0, 1, 1], [], []>} : vector<8x32xf32>, vector<32x128xf32>, vector<8x128xf32> -> vector<8x128xf32>
      %cst_56 = arith.constant 0.353553385 : f32
      %105 = vector.broadcast %cst_56 : f32 to vector<8x128xf32>
      %106 = arith.mulf %104, %105 : vector<8x128xf32>
      %107 = arith.addf %106, %82 : vector<8x128xf32>
      %cst_57 = arith.constant dense<0xFF800000> : vector<8xf32>
      %108 = vector.multi_reduction <maximumf>, %99, %cst_57 [1] : vector<8x128xf32> to vector<8xf32>
      %109 = vector.shape_cast %108 : vector<8xf32> to vector<8x1xf32>
      %cst_58 = arith.constant dense<0xFF800000> : vector<8xf32>
      %110 = vector.multi_reduction <maximumf>, %103, %cst_58 [1] : vector<8x128xf32> to vector<8xf32>
      %111 = vector.shape_cast %110 : vector<8xf32> to vector<8x1xf32>
      %cst_59 = arith.constant dense<0xFF800000> : vector<8xf32>
      %112 = vector.multi_reduction <maximumf>, %107, %cst_59 [1] : vector<8x128xf32> to vector<8xf32>
      %113 = vector.shape_cast %112 : vector<8xf32> to vector<8x1xf32>
      %114 = arith.maximumf %111, %113 : vector<8x1xf32>
      %115 = arith.maximumf %109, %114 : vector<8x1xf32>
      %116 = vector.broadcast %115 : vector<8x1xf32> to vector<8x128xf32>
      %117 = arith.subf %99, %116 : vector<8x128xf32>
      %118 = math.exp %117 : vector<8x128xf32>
      %119 = vector.broadcast %115 : vector<8x1xf32> to vector<8x128xf32>
      %120 = arith.subf %103, %119 : vector<8x128xf32>
      %121 = math.exp %120 : vector<8x128xf32>
      %122 = vector.broadcast %115 : vector<8x1xf32> to vector<8x128xf32>
      %123 = arith.subf %107, %122 : vector<8x128xf32>
      %124 = math.exp %123 : vector<8x128xf32>
      %cst_60 = arith.constant dense<0.000000e+00> : vector<8xf32>
      %125 = vector.multi_reduction <add>, %118, %cst_60 [1] : vector<8x128xf32> to vector<8xf32>
      %126 = vector.shape_cast %125 : vector<8xf32> to vector<8x1xf32>
      %cst_61 = arith.constant dense<0.000000e+00> : vector<8xf32>
      %127 = vector.multi_reduction <add>, %121, %cst_61 [1] : vector<8x128xf32> to vector<8xf32>
      %128 = vector.shape_cast %127 : vector<8xf32> to vector<8x1xf32>
      %129 = arith.addf %126, %128 : vector<8x1xf32>
      %cst_62 = arith.constant dense<0.000000e+00> : vector<8xf32>
      %130 = vector.multi_reduction <add>, %124, %cst_62 [1] : vector<8x128xf32> to vector<8xf32>
      %131 = vector.shape_cast %130 : vector<8xf32> to vector<8x1xf32>
      %132 = arith.addf %129, %131 : vector<8x1xf32>
      %133 = vector.broadcast %132 : vector<8x1xf32> to vector<8x128xf32>
      %134 = arith.divf %118, %133 : vector<8x128xf32>
      %cst_63 = arith.constant dense<0.000000e+00> : vector<8x32xf32>
      %135 = tpu.matmul %134, %67, %cst_63 {dimension_numbers = #tpu.dot_dimension_numbers<[1], [0], [0], [1], [0, 0, 1, 1], [], []>} : vector<8x128xf32>, vector<128x32xf32>, vector<8x32xf32> -> vector<8x32xf32>
      %cst_64 = arith.constant 0.000000e+00 : f32
      %136 = vector.shape_cast %30 : vector<1x32xi1> to vector<1x32xi1>
      %137 = vector.broadcast %136 : vector<1x32xi1> to vector<8x32xi1>
      %138 = vector.broadcast %cst_64 : f32 to vector<8x32xf32>
      %139 = arith.select %137, %135, %138 : vector<8x32xi1>, vector<8x32xf32>
      %140 = arith.addf %83, %139 : vector<8x32xf32>
      %cst_65 = arith.constant 0.000000e+00 : f32
      %141 = vector.shape_cast %15 : vector<32x1xi1> to vector<32x1xi1>
      %142 = vector.broadcast %141 : vector<32x1xi1> to vector<32x128xi1>
      %143 = vector.broadcast %cst_65 : f32 to vector<32x128xf32>
      %144 = arith.select %142, %64, %143 : vector<32x128xi1>, vector<32x128xf32>
      %cst_66 = arith.constant 0.000000e+00 : f32
      %145 = vector.shape_cast %15 : vector<32x1xi1> to vector<32x1xi1>
      %146 = vector.broadcast %145 : vector<32x1xi1> to vector<32x128xi1>
      %147 = vector.broadcast %cst_66 : f32 to vector<32x128xf32>
      %148 = arith.select %146, %70, %147 : vector<32x128xi1>, vector<32x128xf32>
      %cst_67 = arith.constant 0.000000e+00 : f32
      %149 = vector.shape_cast %15 : vector<32x1xi1> to vector<32x1xi1>
      %150 = vector.broadcast %149 : vector<32x1xi1> to vector<32x128xi1>
      %151 = vector.broadcast %cst_67 : f32 to vector<32x128xf32>
      %152 = arith.select %150, %73, %151 : vector<32x128xi1>, vector<32x128xf32>
      %cst_68 = arith.constant dense<0.000000e+00> : vector<8x128xf32>
      %153 = tpu.matmul %59, %144, %cst_68 {dimension_numbers = #tpu.dot_dimension_numbers<[1], [0], [0], [1], [0, 0, 1, 1], [], []>} : vector<8x32xf32>, vector<32x128xf32>, vector<8x128xf32> -> vector<8x128xf32>
      %cst_69 = arith.constant 0.353553385 : f32
      %154 = vector.broadcast %cst_69 : f32 to vector<8x128xf32>
      %155 = arith.mulf %153, %154 : vector<8x128xf32>
      %156 = arith.addf %155, %76 : vector<8x128xf32>
      %cst_70 = arith.constant dense<0.000000e+00> : vector<8x128xf32>
      %157 = tpu.matmul %60, %148, %cst_70 {dimension_numbers = #tpu.dot_dimension_numbers<[1], [0], [0], [1], [0, 0, 1, 1], [], []>} : vector<8x32xf32>, vector<32x128xf32>, vector<8x128xf32> -> vector<8x128xf32>
      %cst_71 = arith.constant 0.353553385 : f32
      %158 = vector.broadcast %cst_71 : f32 to vector<8x128xf32>
      %159 = arith.mulf %157, %158 : vector<8x128xf32>
      %160 = arith.addf %159, %79 : vector<8x128xf32>
      %cst_72 = arith.constant dense<0.000000e+00> : vector<8x128xf32>
      %161 = tpu.matmul %61, %152, %cst_72 {dimension_numbers = #tpu.dot_dimension_numbers<[1], [0], [0], [1], [0, 0, 1, 1], [], []>} : vector<8x32xf32>, vector<32x128xf32>, vector<8x128xf32> -> vector<8x128xf32>
      %cst_73 = arith.constant 0.353553385 : f32
      %162 = vector.broadcast %cst_73 : f32 to vector<8x128xf32>
      %163 = arith.mulf %161, %162 : vector<8x128xf32>
      %164 = arith.addf %163, %82 : vector<8x128xf32>
      %cst_74 = arith.constant dense<0xFF800000> : vector<8xf32>
      %165 = vector.multi_reduction <maximumf>, %156, %cst_74 [1] : vector<8x128xf32> to vector<8xf32>
      %166 = vector.shape_cast %165 : vector<8xf32> to vector<8x1xf32>
      %cst_75 = arith.constant dense<0xFF800000> : vector<8xf32>
      %167 = vector.multi_reduction <maximumf>, %160, %cst_75 [1] : vector<8x128xf32> to vector<8xf32>
      %168 = vector.shape_cast %167 : vector<8xf32> to vector<8x1xf32>
      %cst_76 = arith.constant dense<0xFF800000> : vector<8xf32>
      %169 = vector.multi_reduction <maximumf>, %164, %cst_76 [1] : vector<8x128xf32> to vector<8xf32>
      %170 = vector.shape_cast %169 : vector<8xf32> to vector<8x1xf32>
      %171 = arith.maximumf %168, %170 : vector<8x1xf32>
      %172 = arith.maximumf %166, %171 : vector<8x1xf32>
      %173 = vector.broadcast %172 : vector<8x1xf32> to vector<8x128xf32>
      %174 = arith.subf %156, %173 : vector<8x128xf32>
      %175 = math.exp %174 : vector<8x128xf32>
      %176 = vector.broadcast %172 : vector<8x1xf32> to vector<8x128xf32>
      %177 = arith.subf %160, %176 : vector<8x128xf32>
      %178 = math.exp %177 : vector<8x128xf32>
      %179 = vector.broadcast %172 : vector<8x1xf32> to vector<8x128xf32>
      %180 = arith.subf %164, %179 : vector<8x128xf32>
      %181 = math.exp %180 : vector<8x128xf32>
      %cst_77 = arith.constant dense<0.000000e+00> : vector<8xf32>
      %182 = vector.multi_reduction <add>, %175, %cst_77 [1] : vector<8x128xf32> to vector<8xf32>
      %183 = vector.shape_cast %182 : vector<8xf32> to vector<8x1xf32>
      %cst_78 = arith.constant dense<0.000000e+00> : vector<8xf32>
      %184 = vector.multi_reduction <add>, %178, %cst_78 [1] : vector<8x128xf32> to vector<8xf32>
      %185 = vector.shape_cast %184 : vector<8xf32> to vector<8x1xf32>
      %186 = arith.addf %183, %185 : vector<8x1xf32>
      %cst_79 = arith.constant dense<0.000000e+00> : vector<8xf32>
      %187 = vector.multi_reduction <add>, %181, %cst_79 [1] : vector<8x128xf32> to vector<8xf32>
      %188 = vector.shape_cast %187 : vector<8xf32> to vector<8x1xf32>
      %189 = arith.addf %186, %188 : vector<8x1xf32>
      %190 = vector.broadcast %189 : vector<8x1xf32> to vector<8x128xf32>
      %191 = arith.divf %175, %190 : vector<8x128xf32>
      %cst_80 = arith.constant dense<0.000000e+00> : vector<8x32xf32>
      %192 = tpu.matmul %191, %67, %cst_80 {dimension_numbers = #tpu.dot_dimension_numbers<[1], [0], [0], [1], [0, 0, 1, 1], [], []>} : vector<8x128xf32>, vector<128x32xf32>, vector<8x32xf32> -> vector<8x32xf32>
      %cst_81 = arith.constant 0.000000e+00 : f32
      %193 = vector.shape_cast %35 : vector<1x32xi1> to vector<1x32xi1>
      %194 = vector.broadcast %193 : vector<1x32xi1> to vector<8x32xi1>
      %195 = vector.broadcast %cst_81 : f32 to vector<8x32xf32>
      %196 = arith.select %194, %192, %195 : vector<8x32xi1>, vector<8x32xf32>
      %197 = arith.addf %140, %196 : vector<8x32xf32>
      %cst_82 = arith.constant 0.000000e+00 : f32
      %198 = vector.shape_cast %20 : vector<32x1xi1> to vector<32x1xi1>
      %199 = vector.broadcast %198 : vector<32x1xi1> to vector<32x128xi1>
      %200 = vector.broadcast %cst_82 : f32 to vector<32x128xf32>
      %201 = arith.select %199, %64, %200 : vector<32x128xi1>, vector<32x128xf32>
      %cst_83 = arith.constant 0.000000e+00 : f32
      %202 = vector.shape_cast %20 : vector<32x1xi1> to vector<32x1xi1>
      %203 = vector.broadcast %202 : vector<32x1xi1> to vector<32x128xi1>
      %204 = vector.broadcast %cst_83 : f32 to vector<32x128xf32>
      %205 = arith.select %203, %70, %204 : vector<32x128xi1>, vector<32x128xf32>
      %cst_84 = arith.constant 0.000000e+00 : f32
      %206 = vector.shape_cast %20 : vector<32x1xi1> to vector<32x1xi1>
      %207 = vector.broadcast %206 : vector<32x1xi1> to vector<32x128xi1>
      %208 = vector.broadcast %cst_84 : f32 to vector<32x128xf32>
      %209 = arith.select %207, %73, %208 : vector<32x128xi1>, vector<32x128xf32>
      %cst_85 = arith.constant dense<0.000000e+00> : vector<8x128xf32>
      %210 = tpu.matmul %59, %201, %cst_85 {dimension_numbers = #tpu.dot_dimension_numbers<[1], [0], [0], [1], [0, 0, 1, 1], [], []>} : vector<8x32xf32>, vector<32x128xf32>, vector<8x128xf32> -> vector<8x128xf32>
      %cst_86 = arith.constant 0.353553385 : f32
      %211 = vector.broadcast %cst_86 : f32 to vector<8x128xf32>
      %212 = arith.mulf %210, %211 : vector<8x128xf32>
      %213 = arith.addf %212, %76 : vector<8x128xf32>
      %cst_87 = arith.constant dense<0.000000e+00> : vector<8x128xf32>
      %214 = tpu.matmul %60, %205, %cst_87 {dimension_numbers = #tpu.dot_dimension_numbers<[1], [0], [0], [1], [0, 0, 1, 1], [], []>} : vector<8x32xf32>, vector<32x128xf32>, vector<8x128xf32> -> vector<8x128xf32>
      %cst_88 = arith.constant 0.353553385 : f32
      %215 = vector.broadcast %cst_88 : f32 to vector<8x128xf32>
      %216 = arith.mulf %214, %215 : vector<8x128xf32>
      %217 = arith.addf %216, %79 : vector<8x128xf32>
      %cst_89 = arith.constant dense<0.000000e+00> : vector<8x128xf32>
      %218 = tpu.matmul %61, %209, %cst_89 {dimension_numbers = #tpu.dot_dimension_numbers<[1], [0], [0], [1], [0, 0, 1, 1], [], []>} : vector<8x32xf32>, vector<32x128xf32>, vector<8x128xf32> -> vector<8x128xf32>
      %cst_90 = arith.constant 0.353553385 : f32
      %219 = vector.broadcast %cst_90 : f32 to vector<8x128xf32>
      %220 = arith.mulf %218, %219 : vector<8x128xf32>
      %221 = arith.addf %220, %82 : vector<8x128xf32>
      %cst_91 = arith.constant dense<0xFF800000> : vector<8xf32>
      %222 = vector.multi_reduction <maximumf>, %213, %cst_91 [1] : vector<8x128xf32> to vector<8xf32>
      %223 = vector.shape_cast %222 : vector<8xf32> to vector<8x1xf32>
      %cst_92 = arith.constant dense<0xFF800000> : vector<8xf32>
      %224 = vector.multi_reduction <maximumf>, %217, %cst_92 [1] : vector<8x128xf32> to vector<8xf32>
      %225 = vector.shape_cast %224 : vector<8xf32> to vector<8x1xf32>
      %cst_93 = arith.constant dense<0xFF800000> : vector<8xf32>
      %226 = vector.multi_reduction <maximumf>, %221, %cst_93 [1] : vector<8x128xf32> to vector<8xf32>
      %227 = vector.shape_cast %226 : vector<8xf32> to vector<8x1xf32>
      %228 = arith.maximumf %225, %227 : vector<8x1xf32>
      %229 = arith.maximumf %223, %228 : vector<8x1xf32>
      %230 = vector.broadcast %229 : vector<8x1xf32> to vector<8x128xf32>
      %231 = arith.subf %213, %230 : vector<8x128xf32>
      %232 = math.exp %231 : vector<8x128xf32>
      %233 = vector.broadcast %229 : vector<8x1xf32> to vector<8x128xf32>
      %234 = arith.subf %217, %233 : vector<8x128xf32>
      %235 = math.exp %234 : vector<8x128xf32>
      %236 = vector.broadcast %229 : vector<8x1xf32> to vector<8x128xf32>
      %237 = arith.subf %221, %236 : vector<8x128xf32>
      %238 = math.exp %237 : vector<8x128xf32>
      %cst_94 = arith.constant dense<0.000000e+00> : vector<8xf32>
      %239 = vector.multi_reduction <add>, %232, %cst_94 [1] : vector<8x128xf32> to vector<8xf32>
      %240 = vector.shape_cast %239 : vector<8xf32> to vector<8x1xf32>
      %cst_95 = arith.constant dense<0.000000e+00> : vector<8xf32>
      %241 = vector.multi_reduction <add>, %235, %cst_95 [1] : vector<8x128xf32> to vector<8xf32>
      %242 = vector.shape_cast %241 : vector<8xf32> to vector<8x1xf32>
      %243 = arith.addf %240, %242 : vector<8x1xf32>
      %cst_96 = arith.constant dense<0.000000e+00> : vector<8xf32>
      %244 = vector.multi_reduction <add>, %238, %cst_96 [1] : vector<8x128xf32> to vector<8xf32>
      %245 = vector.shape_cast %244 : vector<8xf32> to vector<8x1xf32>
      %246 = arith.addf %243, %245 : vector<8x1xf32>
      %247 = vector.broadcast %246 : vector<8x1xf32> to vector<8x128xf32>
      %248 = arith.divf %232, %247 : vector<8x128xf32>
      %cst_97 = arith.constant dense<0.000000e+00> : vector<8x32xf32>
      %249 = tpu.matmul %248, %67, %cst_97 {dimension_numbers = #tpu.dot_dimension_numbers<[1], [0], [0], [1], [0, 0, 1, 1], [], []>} : vector<8x128xf32>, vector<128x32xf32>, vector<8x32xf32> -> vector<8x32xf32>
      %cst_98 = arith.constant 0.000000e+00 : f32
      %250 = vector.shape_cast %40 : vector<1x32xi1> to vector<1x32xi1>
      %251 = vector.broadcast %250 : vector<1x32xi1> to vector<8x32xi1>
      %252 = vector.broadcast %cst_98 : f32 to vector<8x32xf32>
      %253 = arith.select %251, %249, %252 : vector<8x32xi1>, vector<8x32xf32>
      %254 = arith.addf %197, %253 : vector<8x32xf32>
      %cst_99 = arith.constant 0.000000e+00 : f32
      %255 = vector.shape_cast %25 : vector<32x1xi1> to vector<32x1xi1>
      %256 = vector.broadcast %255 : vector<32x1xi1> to vector<32x128xi1>
      %257 = vector.broadcast %cst_99 : f32 to vector<32x128xf32>
      %258 = arith.select %256, %64, %257 : vector<32x128xi1>, vector<32x128xf32>
      %cst_100 = arith.constant 0.000000e+00 : f32
      %259 = vector.shape_cast %25 : vector<32x1xi1> to vector<32x1xi1>
      %260 = vector.broadcast %259 : vector<32x1xi1> to vector<32x128xi1>
      %261 = vector.broadcast %cst_100 : f32 to vector<32x128xf32>
      %262 = arith.select %260, %70, %261 : vector<32x128xi1>, vector<32x128xf32>
      %cst_101 = arith.constant 0.000000e+00 : f32
      %263 = vector.shape_cast %25 : vector<32x1xi1> to vector<32x1xi1>
      %264 = vector.broadcast %263 : vector<32x1xi1> to vector<32x128xi1>
      %265 = vector.broadcast %cst_101 : f32 to vector<32x128xf32>
      %266 = arith.select %264, %73, %265 : vector<32x128xi1>, vector<32x128xf32>
      %cst_102 = arith.constant dense<0.000000e+00> : vector<8x128xf32>
      %267 = tpu.matmul %59, %258, %cst_102 {dimension_numbers = #tpu.dot_dimension_numbers<[1], [0], [0], [1], [0, 0, 1, 1], [], []>} : vector<8x32xf32>, vector<32x128xf32>, vector<8x128xf32> -> vector<8x128xf32>
      %cst_103 = arith.constant 0.353553385 : f32
      %268 = vector.broadcast %cst_103 : f32 to vector<8x128xf32>
      %269 = arith.mulf %267, %268 : vector<8x128xf32>
      %270 = arith.addf %269, %76 : vector<8x128xf32>
      %cst_104 = arith.constant dense<0.000000e+00> : vector<8x128xf32>
      %271 = tpu.matmul %60, %262, %cst_104 {dimension_numbers = #tpu.dot_dimension_numbers<[1], [0], [0], [1], [0, 0, 1, 1], [], []>} : vector<8x32xf32>, vector<32x128xf32>, vector<8x128xf32> -> vector<8x128xf32>
      %cst_105 = arith.constant 0.353553385 : f32
      %272 = vector.broadcast %cst_105 : f32 to vector<8x128xf32>
      %273 = arith.mulf %271, %272 : vector<8x128xf32>
      %274 = arith.addf %273, %79 : vector<8x128xf32>
      %cst_106 = arith.constant dense<0.000000e+00> : vector<8x128xf32>
      %275 = tpu.matmul %61, %266, %cst_106 {dimension_numbers = #tpu.dot_dimension_numbers<[1], [0], [0], [1], [0, 0, 1, 1], [], []>} : vector<8x32xf32>, vector<32x128xf32>, vector<8x128xf32> -> vector<8x128xf32>
      %cst_107 = arith.constant 0.353553385 : f32
      %276 = vector.broadcast %cst_107 : f32 to vector<8x128xf32>
      %277 = arith.mulf %275, %276 : vector<8x128xf32>
      %278 = arith.addf %277, %82 : vector<8x128xf32>
      %cst_108 = arith.constant dense<0xFF800000> : vector<8xf32>
      %279 = vector.multi_reduction <maximumf>, %270, %cst_108 [1] : vector<8x128xf32> to vector<8xf32>
      %280 = vector.shape_cast %279 : vector<8xf32> to vector<8x1xf32>
      %cst_109 = arith.constant dense<0xFF800000> : vector<8xf32>
      %281 = vector.multi_reduction <maximumf>, %274, %cst_109 [1] : vector<8x128xf32> to vector<8xf32>
      %282 = vector.shape_cast %281 : vector<8xf32> to vector<8x1xf32>
      %cst_110 = arith.constant dense<0xFF800000> : vector<8xf32>
      %283 = vector.multi_reduction <maximumf>, %278, %cst_110 [1] : vector<8x128xf32> to vector<8xf32>
      %284 = vector.shape_cast %283 : vector<8xf32> to vector<8x1xf32>
      %285 = arith.maximumf %282, %284 : vector<8x1xf32>
      %286 = arith.maximumf %280, %285 : vector<8x1xf32>
      %287 = vector.broadcast %286 : vector<8x1xf32> to vector<8x128xf32>
      %288 = arith.subf %270, %287 : vector<8x128xf32>
      %289 = math.exp %288 : vector<8x128xf32>
      %290 = vector.broadcast %286 : vector<8x1xf32> to vector<8x128xf32>
      %291 = arith.subf %274, %290 : vector<8x128xf32>
      %292 = math.exp %291 : vector<8x128xf32>
      %293 = vector.broadcast %286 : vector<8x1xf32> to vector<8x128xf32>
      %294 = arith.subf %278, %293 : vector<8x128xf32>
      %295 = math.exp %294 : vector<8x128xf32>
      %cst_111 = arith.constant dense<0.000000e+00> : vector<8xf32>
      %296 = vector.multi_reduction <add>, %289, %cst_111 [1] : vector<8x128xf32> to vector<8xf32>
      %297 = vector.shape_cast %296 : vector<8xf32> to vector<8x1xf32>
      %cst_112 = arith.constant dense<0.000000e+00> : vector<8xf32>
      %298 = vector.multi_reduction <add>, %292, %cst_112 [1] : vector<8x128xf32> to vector<8xf32>
      %299 = vector.shape_cast %298 : vector<8xf32> to vector<8x1xf32>
      %300 = arith.addf %297, %299 : vector<8x1xf32>
      %cst_113 = arith.constant dense<0.000000e+00> : vector<8xf32>
      %301 = vector.multi_reduction <add>, %295, %cst_113 [1] : vector<8x128xf32> to vector<8xf32>
      %302 = vector.shape_cast %301 : vector<8xf32> to vector<8x1xf32>
      %303 = arith.addf %300, %302 : vector<8x1xf32>
      %304 = vector.broadcast %303 : vector<8x1xf32> to vector<8x128xf32>
      %305 = arith.divf %289, %304 : vector<8x128xf32>
      %cst_114 = arith.constant dense<0.000000e+00> : vector<8x32xf32>
      %306 = tpu.matmul %305, %67, %cst_114 {dimension_numbers = #tpu.dot_dimension_numbers<[1], [0], [0], [1], [0, 0, 1, 1], [], []>} : vector<8x128xf32>, vector<128x32xf32>, vector<8x32xf32> -> vector<8x32xf32>
      %cst_115 = arith.constant 0.000000e+00 : f32
      %307 = vector.shape_cast %45 : vector<1x32xi1> to vector<1x32xi1>
      %308 = vector.broadcast %307 : vector<1x32xi1> to vector<8x32xi1>
      %309 = vector.broadcast %cst_115 : f32 to vector<8x32xf32>
      %310 = arith.select %308, %306, %309 : vector<8x32xi1>, vector<8x32xf32>
      %311 = arith.addf %254, %310 : vector<8x32xf32>
      %312 = arith.index_cast %56 : i32 to index
      %c0_116 = arith.constant 0 : index
      %313 = vector.load %arg15[%312, %c0_116] : memref<32x32xf32, #tpu.memory_space<vmem>>, vector<8x32xf32>
      tpu.vector_store %arg15[%312, %c0_116], %311 {strides = array<i32>} : memref<32x32xf32, #tpu.memory_space<vmem>>, vector<8x32xf32>,
    }
    %c4_i32_17 = arith.constant 4 : i32
    %c0_18 = arith.constant 0 : index
    %c0_19 = arith.constant 0 : index
    %47 = vector.load %arg15[%c0_18, %c0_19] : memref<32x32xf32, #tpu.memory_space<vmem>>, vector<32x32xf32>
    %c0_20 = arith.constant 0 : index
    %c0_21 = arith.constant 0 : index
    %48 = vector.load %arg3[%c0_20, %c0_21] : memref<32x32xf32, #tpu.memory_space<vmem>>, vector<32x32xf32>
    %cst_22 = arith.constant dense<0.000000e+00> : vector<32x32xf32>
    %49 = tpu.matmul %47, %48, %cst_22 {dimension_numbers = #tpu.dot_dimension_numbers<[1], [0], [0], [1], [0, 0, 1, 1], [], []>} : vector<32x32xf32>, vector<32x32xf32>, vector<32x32xf32> -> vector<32x32xf32>
    %c0_23 = arith.constant 0 : index
    %c0_24 = arith.constant 0 : index
    %50 = vector.load %arg4[%c0_23, %c0_24] : memref<1x32xf32, #tpu.memory_space<vmem>>, vector<1x32xf32>
    %51 = vector.broadcast %50 : vector<1x32xf32> to vector<32x32xf32>
    %52 = arith.addf %49, %51 : vector<32x32xf32>
    %c0_25 = arith.constant 0 : index
    %c0_26 = arith.constant 0 : index
    %53 = vector.load %arg16[%c0_25, %c0_26] : memref<32x32xf32, #tpu.memory_space<vmem>>, vector<32x32xf32>
    tpu.vector_store %arg16[%c0_25, %c0_26], %52 {strides = array<i32>} : memref<32x32xf32, #tpu.memory_space<vmem>>, vector<32x32xf32>,
    %c0_i32_27 = arith.constant 0 : i32
    %c4_i32_28 = arith.constant 4 : i32
    %54 = arith.addi %c0_i32_27, %c4_i32_28 : i32
    %c1_i32_29 = arith.constant 1 : i32
    scf.for %arg17 = %c0_i32_27 to %54 step %c1_i32_29  : i32 {
      %c8_i32_31 = arith.constant 8 : i32
      %55 = arith.muli %arg17, %c8_i32_31 : i32
      %56 = tpu.assume_multiple %55, 8 : i32
      %57 = arith.index_cast %arg17 : i32 to index
      %c0_32 = arith.constant 0 : index
      %c0_33 = arith.constant 0 : index
      %58 = vector.load %arg9[%57, %c0_32, %c0_33] : memref<4x32x128xf32, #tpu.memory_space<vmem>>, vector<1x32x128xf32>
      %59 = vector.shape_cast %58 : vector<1x32x128xf32> to vector<32x128xf32>
      %60 = arith.index_cast %56 : i32 to index
      %c0_34 = arith.constant 0 : index
      %61 = vector.load %arg16[%60, %c0_34] : memref<32x32xf32, #tpu.memory_space<vmem>>, vector<8x32xf32>
      %cst_35 = arith.constant dense<0.000000e+00> : vector<8x128xf32>
      %62 = tpu.matmul %61, %59, %cst_35 {dimension_numbers = #tpu.dot_dimension_numbers<[1], [0], [0], [1], [0, 0, 1, 1], [], []>} : vector<8x32xf32>, vector<32x128xf32>, vector<8x128xf32> -> vector<8x128xf32>
      %cst_36 = arith.constant 0.176776692 : f32
      %63 = vector.broadcast %cst_36 : f32 to vector<8x128xf32>
      %64 = arith.mulf %62, %63 : vector<8x128xf32>
      %65 = math.tanh %64 : vector<8x128xf32>
      %cst_37 = arith.constant 1.000000e+01 : f32
      %66 = vector.broadcast %cst_37 : f32 to vector<8x128xf32>
      %67 = arith.mulf %66, %65 : vector<8x128xf32>
      %68 = arith.index_cast %arg17 : i32 to index
      %c0_38 = arith.constant 0 : index
      %c0_39 = arith.constant 0 : index
      %69 = vector.load %arg10[%68, %c0_38, %c0_39] : memref<4x8x128xf32, #tpu.memory_space<vmem>>, vector<1x8x128xf32>
      %70 = vector.shape_cast %69 : vector<1x8x128xf32> to vector<8x128xf32>
      %71 = arith.addf %67, %70 : vector<8x128xf32>
      %cst_40 = arith.constant dense<0xFF800000> : vector<8xf32>
      %72 = vector.multi_reduction <maximumf>, %71, %cst_40 [1] : vector<8x128xf32> to vector<8xf32>
      %73 = vector.shape_cast %72 : vector<8xf32> to vector<8x1xf32>
      %74 = vector.broadcast %73 : vector<8x1xf32> to vector<8x128xf32>
      %75 = arith.subf %71, %74 : vector<8x128xf32>
      %76 = math.exp %75 : vector<8x128xf32>
      %cst_41 = arith.constant dense<0.000000e+00> : vector<8xf32>
      %77 = vector.multi_reduction <add>, %76, %cst_41 [1] : vector<8x128xf32> to vector<8xf32>
      %78 = vector.shape_cast %77 : vector<8xf32> to vector<8x1xf32>
      %79 = vector.broadcast %78 : vector<8x1xf32> to vector<8x128xf32>
      %80 = arith.divf %76, %79 : vector<8x128xf32>
      %81 = arith.index_cast %56 : i32 to index
      %c0_42 = arith.constant 0 : index
      %82 = vector.load %arg13[%81, %c0_42] : memref<32x128xf32, #tpu.memory_space<vmem>>, vector<8x128xf32>
      tpu.vector_store %arg13[%81, %c0_42], %80 {strides = array<i32>} : memref<32x128xf32, #tpu.memory_space<vmem>>, vector<8x128xf32>,
    }
    %c4_i32_30 = arith.constant 4 : i32
    return
  }
  func.func @transform_0(%arg0: i32) -> (i32, i32) {
    %c0_i32 = arith.constant 0 : i32
    %c0_i32_0 = arith.constant 0 : i32
    return %arg0, %c0_i32 : i32, i32
  }
  func.func @transform_1(%arg0: i32) -> (i32, i32) {
    %c0_i32 = arith.constant 0 : i32
    %c0_i32_0 = arith.constant 0 : i32
    %c0_i32_1 = arith.constant 0 : i32
    return %c0_i32, %c0_i32_0 : i32, i32
  }
  func.func @transform_2(%arg0: i32) -> (i32, i32) {
    %c0_i32 = arith.constant 0 : i32
    %c0_i32_0 = arith.constant 0 : i32
    %c0_i32_1 = arith.constant 0 : i32
    return %c0_i32, %c0_i32_0 : i32, i32
  }
  func.func @transform_3(%arg0: i32) -> (i32, i32) {
    %c0_i32 = arith.constant 0 : i32
    %c0_i32_0 = arith.constant 0 : i32
    %c0_i32_1 = arith.constant 0 : i32
    return %c0_i32, %c0_i32_0 : i32, i32
  }
  func.func @transform_4(%arg0: i32) -> (i32, i32, i32) {
    %c0_i32 = arith.constant 0 : i32
    %c0_i32_0 = arith.constant 0 : i32
    %c0_i32_1 = arith.constant 0 : i32
    return %arg0, %c0_i32, %c0_i32_0 : i32, i32, i32
  }
  func.func @transform_5(%arg0: i32) -> (i32, i32, i32) {
    %c0_i32 = arith.constant 0 : i32
    %c0_i32_0 = arith.constant 0 : i32
    %c0_i32_1 = arith.constant 0 : i32
    return %arg0, %c0_i32, %c0_i32_0 : i32, i32, i32
  }
  func.func @transform_6(%arg0: i32) -> (i32, i32, i32) {
    %c0_i32 = arith.constant 0 : i32
    %c0_i32_0 = arith.constant 0 : i32
    %c0_i32_1 = arith.constant 0 : i32
    return %arg0, %c0_i32, %c0_i32_0 : i32, i32, i32
  }
  func.func @transform_7(%arg0: i32) -> (i32, i32, i32) {
    %c0_i32 = arith.constant 0 : i32
    %c0_i32_0 = arith.constant 0 : i32
    %c0_i32_1 = arith.constant 0 : i32
    return %arg0, %c0_i32, %c0_i32_0 : i32, i32, i32
  }
  func.func @transform_8(%arg0: i32) -> (i32, i32, i32) {
    %c0_i32 = arith.constant 0 : i32
    %c0_i32_0 = arith.constant 0 : i32
    %c0_i32_1 = arith.constant 0 : i32
    return %arg0, %c0_i32, %c0_i32_0 : i32, i32, i32
  }
  func.func @transform_9(%arg0: i32) -> (i32, i32, i32) {
    %c0_i32 = arith.constant 0 : i32
    %c0_i32_0 = arith.constant 0 : i32
    %c0_i32_1 = arith.constant 0 : i32
    return %arg0, %c0_i32, %c0_i32_0 : i32, i32, i32
  }
  func.func @transform_10(%arg0: i32) -> (i32, i32, i32) {
    %c0_i32 = arith.constant 0 : i32
    %c0_i32_0 = arith.constant 0 : i32
    %c0_i32_1 = arith.constant 0 : i32
    return %arg0, %c0_i32, %c0_i32_0 : i32, i32, i32
  }
  func.func @transform_11(%arg0: i32) -> (i32, i32, i32) {
    %c0_i32 = arith.constant 0 : i32
    %c0_i32_0 = arith.constant 0 : i32
    %c0_i32_1 = arith.constant 0 : i32
    return %arg0, %c0_i32, %c0_i32_0 : i32, i32, i32
  }
  func.func @transform_12(%arg0: i32) -> (i32, i32) {
    %c0_i32 = arith.constant 0 : i32
    %c0_i32_0 = arith.constant 0 : i32
    return %arg0, %c0_i32 : i32, i32
  }
}

</mosaic_0001>

<bundles_post_ra>
// kernel: tpu_custom_call.1
= control target key start
LH: loop header
LB: loop body
LE: loop exit
PB: predicated region body
PF: predicated region fallthrough
CT: control target
= control target key end

     0   :  { %s4030_s0 = inlined_call_operand.vmem [shape: f32[64,32], index: 0, kind: input, shape index: {}]   ;;  %s4031_s1 = inlined_call_operand.vmem [shape: f32[32,96], index: 1, kind: input, shape index: {}]   ;;  %s4032_s2 = inlined_call_operand.vmem [shape: f32[32,32], index: 2, kind: input, shape index: {}]   ;;  %s4033_s3 = inlined_call_operand.vmem [shape: f32[1,32], index: 3, kind: input, shape index: {}]   ;;  %s4034_s4 = inlined_call_operand.vmem [shape: f32[8,32,128], index: 4, kind: input, shape index: {}]   ;;  %s4035_s5 = inlined_call_operand.vmem [shape: f32[8,128,32], index: 5, kind: input, shape index: {}]   ;;  %s4036_s6 = inlined_call_operand.vmem [shape: f32[8,32,128], index: 6, kind: input, shape index: {}]   ;;  %s4037_s7 = inlined_call_operand.vmem [shape: f32[8,32,128], index: 7, kind: input, shape index: {}]   ;;  %s4038_s8 = inlined_call_operand.vmem [shape: f32[8,32,128], index: 8, kind: input, shape index: {}]   ;;  %s4039_s9 = inlined_call_operand.vmem [shape: f32[8,8,128], index: 9, kind: input, shape index: {}]   ;;  %s4040_s10 = inlined_call_operand.vmem [shape: f32[8,8,128], index: 10, kind: input, shape index: {}]   ;;  %s4041_s11 = inlined_call_operand.vmem [shape: f32[8,8,128], index: 11, kind: input, shape index: {}]   ;;  %s4042_s12 = inlined_call_operand.hbm [shape: f32[64,128], index: 12, kind: output, shape index: {}]  }
   0x1   :  { %4051 = sst [smem:[#allocation14_spill]] %s4030_s0 }
   0x2   :  { %4052 = sst [smem:[#allocation15_spill]] %s4031_s1 }
   0x3   :  { %4053 = sst [smem:[#allocation16_spill]] %s4035_s5 }
   0x4   :  { %4054 = sst [smem:[#allocation17_spill]] %s4039_s9 }
   0x5   :  { %4055 = sst [smem:[#allocation18_spill]] %s4042_s12 }
   0x6   :  { %17 = vsyncpa [#allocation6], 0 }
   0x7   :  { %19 = vsyncpa [#allocation6 + $0x1], 0  ;;  %s3510_s21 = smov 0   ;;  %s3512_s22 = smov 0  }
   0x8   :  { %s3514_s23 = smov 0   ;;  %s3516_s24 = smov 0  }
   0x9 LB: > { %4056 = sst [smem:[#allocation8_spill]] %s3412_s21  ;;  %s3531_s25 = sadd.s32 4294967295, %s3424_s24   ;;  %s3424_s24 = sphi %s3516_s24, %s4086_s24   ;;  %s3420_s23 = sphi %s3514_s23, %s4088_s23   ;;  %s3416_s22 = sphi %s3512_s22, %s4090_s22   ;;  %s3412_s21 = sphi %s3510_s21, %s4089_s21  }
   0xa   : > { %4057 = sst [smem:[#allocation9_spill]] %s3420_s23  ;;  %s2623_s26 = sadd.s32 4294967294, %s3424_s24  }
   0xb   : > { %4058 = sst [smem:[#allocation10_spill]] %s3424_s24  ;;  %s3535_s27 = sadd.s32 1, %s3424_s24  }
   0xc   : > { %4059 = sst [smem:[#allocation11_spill]] %s3535_s27  ;;  %s329_s28 = sadd.s32 1, %s3420_s23 }
   0xd   : > { %s326_s29 = ssub.s32 %s3424_s24, %s3535_s27  ;;  %p339_p0 = scmp.ne.s32.totalorder %s3420_s23, %s3416_s22 }
   0xe   : > { %p327_p1 = scmp.eq.s32.totalorder %s326_s29, 0  ;;  %p340_p2 = scmp.eq.s32.totalorder %s3531_s25, 1 }
   0xf   : > { %p345_p3 = scmp.ne.s32.totalorder %s3416_s22, %s3412_s21  ;;  %p346_p4 = scmp.eq.s32.totalorder %s2623_s26, 1 }
  0x10   : > { %s3546_s30 = scalar_select %p327_p1, %s3420_s23, %s329_s28  }
  0x11   : > { %p3548_p5 = por %p340_p2, %p339_p0  ;;  %p3552_p6 = por %p346_p4, %p345_p3 }
  0x12   : > { %4060 = sst [smem:[#allocation12_spill]] %s3546_s30  ;;  %p2626_p7 = scmp.ge.s32.totalorder %s3424_s24, 1 }
  0x13   : > { %s4062_s14 = scalar_select %p3552_p6, 1, 0 }
  0x14   : > { %p459_p8 = scmp.lt.s32.totalorder %s3424_s24, 3 }
  0x15   : > { %4063 = sst [smem:[#allocation13_spill]] %s4062_s14 }
  0x16   : > { %p460_p9 = pnand %p2626_p7, %p459_p8 }
  0x17   : > { %s4044_s15 = sand.u32 (!%p460_p9), 1, %s3416_s22   ;;  %s4064_s1 = sld [smem:[#allocation15_spill]] (!%p460_p9)  ;;  %vm614_vm0 = vcmask (!%p460_p9), 261120   ;;  %v722_v10 = vlaneseq (!%p460_p9)  ;;  %vm712_vm11 = vcmask (!%p460_p9), 785408  }
  0x18   : > { %463 = sbr.rel (%p460_p9) target bundleno = 3030 (0xbd6), region = 68  ;;  %s2628_s28 = sshll.u32 (!%p460_p9), %s3531_s25, 2 }
  0x19   : > { %s3571_s29 = sshll.u32 (!%p460_p9), %s4044_s15, 5  ;;  %p547_p10 = scmp.lt.s32.totalorder (!%p460_p9), %s2628_s28, 7  ;;  %v3623_v11 = vand.u32 (!%p460_p9), 127, %v722_v10 }
  0x1a   : > { %s4065_s0 = sld [smem:[#allocation14_spill]] (!%p460_p9)  ;;  %s4066_s5 = sld [smem:[#allocation16_spill]] (!%p460_p9) }
  0x1b   : > { %s4067_s9 = sld [smem:[#allocation17_spill]] (!%p460_p9)  ;;  %vm775_vm1 = vcmp.ge.s32.totalorder (!%p460_p9), %v3623_v11, 8  ;;  %vm776_vm2 = vcmp.lt.s32.totalorder (!%p460_p9), %v3623_v11, 16  ;;  %vm778_vm3 = vcmp.ge.s32.totalorder (!%p460_p9), %v3623_v11, 16  ;;  %vm779_vm4 = vcmp.lt.s32.totalorder (!%p460_p9), %v3623_v11, 24  ;;  %s3645_s26 = smov (!%p460_p9), 0  }
  0x1c   : > { %vm773_vm5 = vcmp.lt.s32.totalorder (!%p460_p9), %v3623_v11, 8  ;;  %vm3630_vm6 = vmand (!%p460_p9), %vm775_vm1, %vm776_vm2  ;;  %vm781_vm7 = vcmp.ge.s32.totalorder (!%p460_p9), %v3623_v11, 24  ;;  %vm782_vm8 = vcmp.lt.s32.totalorder (!%p460_p9), %v3623_v11, 32 }
  0x1d   : > { %v610_v0 = vld [vmem:[%s4064_s1] sm:$0xff] (!%p460_p9)  ;;  %v611_v1 = vld [vmem:[%s4064_s1 + $0x8] sm:$0xff] (!%p460_p9)  ;;  %v612_v2 = vld [vmem:[%s4064_s1 + $0x10] sm:$0xff] (!%p460_p9) }
  0x1e   : > { %v3095_v3 = vpack.c.bf16 (!%p460_p9), %v611_v1, %v610_v0  ;;  %v613_v4 = vld [vmem:[%s4064_s1 + $0x18] sm:$0xff] (!%p460_p9)  ;;  %vm3636_vm9 = vmand (!%p460_p9), %vm778_vm3, %vm779_vm4 }
  0x1f   : > { %v3099_v5 = vpack.c.bf16 %v613_v4, %v612_v2  ;;  %s4092_s28 = smov (!%p547_p10, %s2628_s28), 7  ;;  %vm3640_vm10 = vmand %vm781_vm7, %vm782_vm8 }
  0x20   : > { %3096 = vmatprep.subr.bf16.mxu0 %v3095_v3  ;;  %3243 = vmatprep.subr.bf16.mxu1 %v3095_v3  ;;  %s3576_s16 = sshll.u32 %s4092_s28, 3  ;;  %s3578_s17 = sshll.u32 %s4092_s28, 5 }
  0x21   : > { %3098 = vmatpush3.bf16.msra.mxu0 %v3095_v3  ;;  %3245 = vmatpush3.bf16.msra.mxu1 %v3095_v3  ;;  %s550_s23 = scalar_lea.vmem %s4065_s0, %s3576_s16  ;;  %s2684_s15 = sshll.u32 %s4092_s28, 7 }
  0x22   : > { %3100 = vmatprep.subr.bf16.mxu0 %v3099_v5  ;;  %3244 = vmatprep.subr.bf16.mxu1 %v3099_v5  ;;  %v606_v6 = vld [vmem:[%s550_s23] sm:$0xff]  ;;  %v608_v7 = vld [vmem:[%s550_s23 + $0x10] sm:$0xff]  ;;  %s3595_s0 = scalar_lea.vmem %s4066_s5, %s2684_s15  ;;  %s578_s20 = scalar_lea.vmem %s4037_s7, %s3578_s17  ;;  %v607_v8 = vld [vmem:[%s550_s23 + $0x8] sm:$0xff] }
  0x23   : > { %v609_v9 = vld [vmem:[%s550_s23 + $0x18] sm:$0xff]  ;;  %s3609_s24 = scalar_lea.vmem %s4067_s9, %s3576_s16  ;;  %2828 = vmatprep.mubr.msk.f32.mxu0 %vm614_vm0, %v606_v6  ;;  %2831 = vmatprep.mubr.msk.f32.mxu1 %vm614_vm0, %v608_v7 }
  0x25   : > { %3102 = vmatpush3.bf16.msra.mxu0 %v3099_v5  ;;  %3246 = vmatpush3.bf16.msra.mxu1 %v3099_v5 }
  0x28   : > { %2829 = vmatmul.mubr.msk.f32.vlgmr.msra.gmra.mrb[0].mxu0 %vm614_vm0, %v607_v8  ;;  %2832 = vmatmul.mubr.msk.f32.vlgmr.msra.gmra.mrb[0].mxu1 %vm614_vm0, %v609_v9 }
  0xfb   : > { %v2830_v15 = vpop.f32.mrb[0].mxu0  ;;  %v2833_v16 = vpop.f32.mrb[0].mxu1 }
  0xfc   : > { %714 = vst.msk [vmem:[#allocation2 + $0x8] sm:$0xff] %vm712_vm11, %v2830_v15  ;;  %716 = vst.msk [vmem:[#allocation2 + $0x18] sm:$0xff] %vm712_vm11, %v2833_v16  ;;  %v693_v17 = vpop.f32.mrb[1].mxu0  ;;  %v703_v18 = vpop.f32.mrb[1].mxu1 }
  0xfd   : > { %713 = vst.msk [vmem:[#allocation2] sm:$0xff] %vm712_vm11, %v693_v17  ;;  %715 = vst.msk [vmem:[#allocation2 + $0x10] sm:$0xff] %vm712_vm11, %v703_v18 }
  0xfe LB: >> { %v3434_v19 = vmov 0.0   ;;  %vm3435_vm12 = vmmov 0   ;;  %s3654_s28 = sshll.u32 %s3428_s26, 3  ;;  %s2656_s15 = sshll.u32 %s3428_s26, 5  ;;  %v3438_v24 = vmov 0.0|0.0   ;;  %s3428_s26 = sphi %s3645_s26, %s789_s26  }
  0xff   : >> { %2834 = vmatprep.subr.mxu0 %v3434_v19  ;;  %2836 = vmatprep.mubr.msk.f32.mxu0 %vm3435_vm12, %v3434_v19  ;;  %s791_s27 = scalar_lea.vmem [#allocation2], %s3654_s28  ;;  %s3436_s18 = smov 64  }
 0x100   : >> { %2839 = vmatprep.subr.mxu1 %v3434_v19  ;;  %2841 = vmatprep.mubr.msk.f32.mxu1 %vm3435_vm12, %v3434_v19  ;;  %s4074_s14 = scalar_lea.vmem %s4034_s4, %s3578_s17  ;;  %s3676_s5 = scalar_lea.vmem %s578_s20, %s2656_s15 }
 0x101   : >> { %s3669_s1 = scalar_lea.vmem %s4074_s14, %s2656_s15  ;;  %v823_v22 = vld [vmem:[%s3676_s5] sm:$0xff]  ;;  %s3437_s21 = smov 96   ;;  %v824_v30 = vld [vmem:[%s3676_s5 + $0x8] sm:$0xff] }
 0x102   : >> { %v795_v21 = vld [vmem:[%s3669_s1] sm:$0xff]  ;;  %v796_v25 = vld [vmem:[%s3669_s1 + $0x8] sm:$0xff]  ;;  %v3134_v32 = vpack.c.bf16 %v824_v30, %v3434_v19  ;;  %s827_s9 = scalar_lea.vmem %s3609_s24, %s3654_s28 }
 0x103   : >> { %2835 = vmatpush3.msra.mxu0 %v795_v21  ;;  %v3128_v26 = vpack.c.bf16 %v796_v25, %v3434_v19  ;;  %v3731_v34 = vld [vmem:[%s827_s9] sm:$0xff]  ;;  %s2657_s9 = sshll.u32 %s3428_s26, 7  ;;  %s789_s26 = sadd.s32 1, %s3428_s26  }
 0x104   : >> { %v3660_v20 = vld [vmem:[%s791_s27] sm:$0xff]  ;;  %2844 = vmatprep.subr.mxu0 %v3434_v19  ;;  %s3757_s23 = scalar_lea.vmem %s3595_s0, %s2657_s9  ;;  %p786_p11 = scmp.ge.s32.totalorder %s789_s26, 4  }
 0x105   : >> { %1004 = vrot.lane.b32.xlu0 %v3660_v20, %s3436_s18  ;;  %s4075_s18 = scalar_lea.vmem %s4036_s6, %s3578_s17  ;;  %2837 = vmatmul.mubr.msk.f32.vlgmr.msra.gmra.mrb[0].mxu0 %vm614_vm0, %v3660_v20  ;;  %v801_v60 = vld [vmem:[%s3757_s23] sm:$0xff]  ;;  %v802_v61 = vld [vmem:[%s3757_s23 + $0x8] sm:$0xff]  ;;  %v803_v62 = vld [vmem:[%s3757_s23 + $0x10] sm:$0xff]  ;;  %s3958_s20 = smov (%p786_p11), 0  }
 0x106   : >> { %s3685_s12 = scalar_lea.vmem %s4075_s18, %s2656_s15  ;;  %2845 = vmatpush3.msra.mxu0 %v823_v22  ;;  %2846 = vmatprep.mubr.msk.f32.mxu0 %vm3435_vm12, %v3434_v19  ;;  %s4076_s15 = scalar_lea.vmem %s4040_s10, %s3576_s16  ;;  %v3762_v63 = vpack.c.bf16 %v802_v61, %v801_v60  ;;  %v804_v0 = vld [vmem:[%s3757_s23 + $0x18] sm:$0xff]  ;;  %v805_v2 = vld [vmem:[%s3757_s23 + $0x20] sm:$0xff]  ;;  %v806_v3 = vld [vmem:[%s3757_s23 + $0x28] sm:$0xff] }
 0x107   : >> { %v818_v23 = vld [vmem:[%s3685_s12] sm:$0xff]  ;;  %3127 = vmatprep.subr.bf16.mxu0 %v3438_v24  ;;  %v819_v27 = vld [vmem:[%s3685_s12 + $0x8] sm:$0xff]  ;;  %s829_s19 = scalar_lea.vmem %s4076_s15, %s3654_s28  ;;  %s4077_s18 = scalar_lea.vmem %s4041_s11, %s3576_s16  ;;  %v3766_v1 = vpack.c.bf16 %v804_v0, %v803_v62  ;;  %v3774_v4 = vpack.c.bf16 %v806_v3, %v805_v2 }
 0x108   : >> { %2840 = vmatpush3.msra.mxu1 %v818_v23  ;;  %v3131_v29 = vpack.c.bf16 %v819_v27, %v3434_v19  ;;  %v3740_v42 = vld [vmem:[%s829_s19] sm:$0xff] }
 0x109   : >> { %928 = vrot.lane.b32.xlu0 %v3660_v20, %s3437_s21  ;;  %3103 = vmatprep.subr.bf16.mxu1 %v3438_v24  ;;  %s831_s21 = scalar_lea.vmem %s4077_s18, %s3654_s28  ;;  %v2670_v13 = vld [vmem:[%s4033_s3] ss:$0 sm:$0xff] (%p786_p11) }
 0x10a   : >> { %v3749_v49 = vld [vmem:[%s831_s21] sm:$0xff] }
 0x177   : >> { %v3699_v28 = vpop.permute.xlu0 %1004 }
 0x178   : >> { %2847 = vmatmul.mubr.msk.f32.vlgmr.msra.gmra.mrb[2].mxu0 %vm614_vm0, %v3699_v28 }
 0x179   : >> { %3129 = vmatpush3.bf16.msra.mxu0 %v3128_v26  ;;  %2888 = vmatprep.mubr.msk.f32.mxu0 %vm3435_vm12, %v3434_v19 }
 0x17a   : >> { %3130 = vmatprep.subr.bf16.mxu0 %v3438_v24 }
 0x17b   : >> { %v3708_v31 = vpop.permute.xlu0 %928 }
 0x17c   : >> { %2842 = vmatmul.mubr.msk.f32.vlgmr.msra.gmra.mrb[0].mxu1 %vm614_vm0, %v3708_v31  ;;  %2889 = vmatmul.mubr.msk.f32.vlgmr.msra.gmra.mrb[4].mxu0 %vm614_vm0, %v3660_v20 }
 0x17d   : >> { %3132 = vmatpush3.bf16.msra.mxu0 %v3131_v29  ;;  %2895 = vmatprep.mubr.msk.f32.mxu0 %vm3435_vm12, %v3434_v19 }
 0x17e   : >> { %3133 = vmatprep.subr.bf16.mxu0 %v3438_v24  ;;  %2881 = vmatprep.mubr.msk.f32.mxu1 %vm3435_vm12, %v3434_v19 }
 0x17f   : >> { %3105 = vmatpush3.bf16.msra.mxu1 %v3762_v63 }
 0x180   : >> { %2896 = vmatmul.mubr.msk.f32.vlgmr.msra.gmra.mrb[6].mxu0 %vm614_vm0, %v3708_v31  ;;  %3106 = vmatprep.subr.bf16.mxu1 %v3438_v24 }
 0x181   : >> { %3135 = vmatpush3.bf16.msra.mxu0 %v3134_v32  ;;  %2902 = vmatprep.mubr.msk.f32.mxu0 %vm3435_vm12, %v3434_v19 }
 0x182   : >> { %3136 = vmatprep.subr.bf16.mxu0 %v3438_v24 }
 0x183   : >> { %3108 = vmatpush3.bf16.msra.mxu1 %v3766_v1 }
 0x184   : >> { %2903 = vmatmul.mubr.msk.f32.vlgmr.msra.gmra.mrb[8].mxu0 %vm614_vm0, %v3699_v28  ;;  %3109 = vmatprep.subr.bf16.mxu1 %v3438_v24 }
 0x185   : >> { %2937 = vmatprep.mubr.msk.f32.mxu0 %vm3435_vm12, %v3434_v19  ;;  %3138 = vmatpush3.bf16.msra.mxu0 %v3762_v63 }
 0x186   : >> { %3139 = vmatprep.subr.bf16.mxu0 %v3438_v24 }
 0x187   : >> { %3111 = vmatpush3.bf16.msra.mxu1 %v3774_v4 }
 0x188   : >> { %3112 = vmatprep.subr.bf16.mxu1 %v3438_v24 }
 0x189   : >> { %3141 = vmatpush3.bf16.msra.mxu0 %v3766_v1 }
 0x18a   : >> { %3142 = vmatprep.subr.bf16.mxu0 %v3438_v24 }
 0x18d   : >> { %3144 = vmatpush3.bf16.msra.mxu0 %v3774_v4 }
 0x18e   : >> { %3145 = vmatprep.subr.bf16.mxu0 %v3438_v24 }
 0x1d8   : >> { %v922_v33 = vpop.f32.mrb[0].mxu0 }
 0x1d9   : >> { %v926_v35 = vmul.f32 0.35355338, %v922_v33  ;;  %v2838_v36 = vpop.f32.mrb[1].mxu0 }
 0x1db   : >> { %v927_v37 = vadd.f32 %v926_v35, %v3731_v34 }
 0x1dd   : >> { %1080 = vmax.xlane.f32.xlu0 %v927_v37 }
 0x24b   : >> { %v1074_v38 = vpop.f32.mrb[2].mxu0 }
 0x24c   : >> { %v2848_v39 = vpop.f32.mrb[3].mxu0  ;;  %v1078_v46 = vmul.f32 0.35355338, %v1074_v38 }
 0x24e   : >> { %v1079_v52 = vadd.f32 %v1078_v46, %v3749_v49 }
 0x24f   : >> { %v998_v40 = vpop.f32.mrb[0].mxu1  ;;  %v1267_v41 = vpop.f32.mrb[4].mxu0 }
 0x250   : >> { %v1002_v43 = vmul.f32 0.35355338, %v998_v40  ;;  %v2843_v44 = vpop.f32.mrb[1].mxu1  ;;  %v2890_v45 = vpop.f32.mrb[5].mxu0  ;;  %v1271_v57 = vmul.f32 0.35355338, %v1267_v41 }
 0x251   : >> { %v808_v44 = vld [vmem:[%s3757_s23 + $0x38] sm:$0xff] }
 0x252   : >> { %v1003_v47 = vadd.f32 %v1002_v43, %v3740_v42  ;;  %v1272_v59 = vadd.f32 %v1271_v57, %v3731_v34  ;;  %v807_v43 = vld [vmem:[%s3757_s23 + $0x30] sm:$0xff] }
 0x253   : >> { %v1339_v48 = vpop.f32.mrb[6].mxu0  ;;  %v3791_v45 = vpack.c.bf16 %v808_v44, %v807_v43  ;;  %v815_v57 = vld [vmem:[%s3757_s23 + $0x70] sm:$0xff] }
 0x254   : >> { %1082 = vmax.xlane.f32.xlu1 %v1003_v47  ;;  %v2897_v50 = vpop.f32.mrb[7].mxu0  ;;  %v1343_v51 = vmul.f32 0.35355338, %v1339_v48  ;;  %v810_v48 = vld [vmem:[%s3757_s23 + $0x48] sm:$0xff] }
 0x255   : >> { %3114 = vmatpush3.bf16.msra.mxu1 %v3791_v45  ;;  %3147 = vmatpush3.bf16.msra.mxu0 %v3791_v45 }
 0x256   : >> { %v1344_v56 = vadd.f32 %v1343_v51, %v3740_v42  ;;  %3115 = vmatprep.subr.bf16.mxu1 %v3438_v24  ;;  %3148 = vmatprep.subr.bf16.mxu0 %v3438_v24  ;;  %v811_v51 = vld [vmem:[%s3757_s23 + $0x50] sm:$0xff] }
 0x257   : >> { %v1411_v53 = vpop.f32.mrb[8].mxu0 }
 0x258   : >> { %1084 = vmax.xlane.f32.xlu1 %v1079_v52  ;;  %v2904_v54 = vpop.f32.mrb[9].mxu0  ;;  %v1415_v55 = vmul.f32 0.35355338, %v1411_v53 }
 0x259   : >> { %v813_v54 = vld [vmem:[%s3757_s23 + $0x60] sm:$0xff] }
 0x25a   : >> { %v1416_v58 = vadd.f32 %v1415_v55, %v3749_v49  ;;  %v814_v55 = vld [vmem:[%s3757_s23 + $0x68] sm:$0xff] }
 0x25c   : >> { %1419 = vmax.xlane.f32.xlu1 %v1344_v56 }
 0x260   : >> { %1421 = vmax.xlane.f32.xlu1 %v1416_v58 }
 0x264   : >> { %1417 = vmax.xlane.f32.xlu1 %v1272_v59 }
 0x26a   : >> { %v1081_v8 = vpop.xlane.xlu0 %1080 }
 0x2e1   : >> { %v1083_v5 = vpop.xlane.xlu1 %1082 }
 0x2e5   : >> { %v1085_v6 = vpop.xlane.xlu1 %1084 }
 0x2e6   : >> { %v1086_v7 = vmax.f32 %v1083_v5, %v1085_v6 }
 0x2e8   : >> { %v1087_v9 = vmax.f32 %v1081_v8, %v1086_v7 }
 0x2e9   : >> { %v1420_v10 = vpop.xlane.xlu1 %1419 }
 0x2ea   : >> { %v1088_v15 = vsub.f32 %v927_v37, %v1087_v9  ;;  %v1091_v16 = vsub.f32 %v1003_v47, %v1087_v9  ;;  %v1094_v22 = vsub.f32 %v1079_v52, %v1087_v9  ;;  %v809_v47 = vld [vmem:[%s3757_s23 + $0x40] sm:$0xff]  ;;  %v812_v52 = vld [vmem:[%s3757_s23 + $0x58] sm:$0xff] }
 0x2eb   : >> { %v3799_v50 = vpack.c.bf16 %v810_v48, %v809_v47  ;;  %v3807_v53 = vpack.c.bf16 %v812_v52, %v811_v51 }
 0x2ec   : >> { %v1089_v17 = vmul.f32 1.442695, %v1088_v15  ;;  %v1092_v21 = vmul.f32 1.442695, %v1091_v16  ;;  %v1095_v26 = vmul.f32 1.442695, %v1094_v22 }
 0x2ed   : >> { %v1422_v18 = vpop.xlane.xlu1 %1421  ;;  %3117 = vmatpush3.bf16.msra.mxu1 %v3799_v50  ;;  %3150 = vmatpush3.bf16.msra.mxu0 %v3799_v50  ;;  %v820_v15 = vld [vmem:[%s3685_s12 + $0x10] sm:$0xff] }
 0x2ee   : >> { %3316 = vpow2.f32 %v1089_v17  ;;  %v1423_v23 = vmax.f32 %v1420_v10, %v1422_v18  ;;  %3118 = vmatprep.subr.bf16.mxu1 %v3438_v24  ;;  %3151 = vmatprep.subr.bf16.mxu0 %v3438_v24  ;;  %v825_v18 = vld [vmem:[%s3676_s5 + $0x10] sm:$0xff] }
 0x2ef   : >> { %3318 = vpow2.f32 %v1092_v21  ;;  %v821_v21 = vld [vmem:[%s3685_s12 + $0x18] sm:$0xff]  ;;  %v797_v22 = vld [vmem:[%s3669_s1 + $0x10] sm:$0xff] }
 0x2f0   : >> { %3320 = vpow2.f32 %v1095_v26 }
 0x2f1   : >> { %v1418_v25 = vpop.xlane.xlu1 %1417  ;;  %3120 = vmatpush3.bf16.msra.mxu1 %v3807_v53  ;;  %3153 = vmatpush3.bf16.msra.mxu0 %v3807_v53 }
 0x2f2   : >> { %v1424_v27 = vmax.f32 %v1418_v25, %v1423_v23  ;;  %3121 = vmatprep.subr.bf16.mxu1 %v3438_v24  ;;  %3154 = vmatprep.subr.bf16.mxu0 %v3438_v24  ;;  %v3198_v23 = vpack.c.bf16 %v821_v21, %v3434_v19  ;;  %v826_v25 = vld [vmem:[%s3676_s5 + $0x18] sm:$0xff]  ;;  %s2192_s5 = scalar_lea.vmem [#allocation3], %s3654_s28 }
 0x2f3   : >> { %v3203_v26 = vpack.c.bf16 %v826_v25, %v3434_v19 }
 0x2f4   : >> { %v1425_v29 = vsub.f32 %v1272_v59, %v1424_v27  ;;  %v1431_v30 = vsub.f32 %v1416_v58, %v1424_v27  ;;  %v1428_v33 = vsub.f32 %v1344_v56, %v1424_v27  ;;  %v3812_v56 = vpack.c.bf16 %v814_v55, %v813_v54  ;;  %v816_v58 = vld [vmem:[%s3757_s23 + $0x78] sm:$0xff] }
 0x2f5   : >> { %v3823_v59 = vpack.c.bf16 %v816_v58, %v815_v57 }
 0x2f6   : >> { %v1426_v32 = vmul.f32 1.442695, %v1425_v29  ;;  %v1432_v35 = vmul.f32 1.442695, %v1431_v30  ;;  %v1429_v37 = vmul.f32 1.442695, %v1428_v33  ;;  %3123 = vmatpush3.bf16.msra.mxu1 %v3812_v56  ;;  %3156 = vmatpush3.bf16.msra.mxu0 %v3812_v56 }
 0x2f7   : >> { %3124 = vmatprep.subr.bf16.mxu1 %v3438_v24  ;;  %3157 = vmatprep.subr.bf16.mxu0 %v3438_v24 }
 0x2f8   : >> { %v3783_v36 = vpop.eup %3316  ;;  %3322 = vpow2.f32 %v1426_v32 }
 0x2f9   : >> { %1097 = vadd.xlane.f32.xlu1 %v3783_v36  ;;  %3324 = vpow2.f32 %v1432_v35  ;;  %v3319_v38 = vpop.eup %3318 }
 0x2fa   : >> { %3326 = vpow2.f32 %v1429_v37  ;;  %v3321_v39 = vpop.eup %3320  ;;  %3126 = vmatpush3.bf16.msra.mxu1 %v3823_v59  ;;  %3159 = vmatpush3.bf16.msra.mxu0 %v3823_v59 }
 0x2fb   : >> { %3162 = vmatprep.subr.bf16.mxu1 %v3438_v24  ;;  %3160 = vmatprep.subr.bf16.mxu0 %v3438_v24 }
 0x2fd   : >> { %1099 = vadd.xlane.f32.xlu1 %v3319_v38 }
 0x301   : >> { %1102 = vadd.xlane.f32.xlu1 %v3321_v39 }
 0x302   : >> { %v3786_v40 = vpop.eup %3322 }
 0x303   : >> { %v3325_v41 = vpop.eup %3324 }
 0x304   : >> { %1439 = vadd.xlane.f32.xlu0 %v3325_v41  ;;  %v3327_v46 = vpop.eup %3326 }
 0x305   : >> { %1434 = vadd.xlane.f32.xlu1 %v3786_v40 }
 0x309   : >> { %1436 = vadd.xlane.f32.xlu1 %v3327_v46 }
 0x386   : >> { %v1098_v60 = vpop.xlane.xlu1 %1097 }
 0x38a   : >> { %v1100_v61 = vpop.xlane.xlu1 %1099 }
 0x38b   : >> { %v1101_v62 = vadd.f32 %v1100_v61, %v1098_v60 }
 0x38e   : >> { %v1103_v0 = vpop.xlane.xlu1 %1102 }
 0x38f   : >> { %v1104_v2 = vadd.f32 %v1103_v0, %v1101_v62 }
 0x391   : >> { %3328 = vrcp.f32 %v1104_v2  ;;  %v1440_v7 = vpop.xlane.xlu0 %1439 }
 0x392   : >> { %v1435_v3 = vpop.xlane.xlu1 %1434 }
 0x396   : >> { %v1437_v5 = vpop.xlane.xlu1 %1436 }
 0x397   : >> { %v1438_v6 = vadd.f32 %v1437_v5, %v1435_v3 }
 0x399   : >> { %v1441_v8 = vadd.f32 %v1440_v7, %v1438_v6 }
 0x39b   : >> { %v3329_v9 = vpop.eup %3328  ;;  %3330 = vrcp.f32 %v1441_v8 }
 0x39c   : >> { %v1106_v10 = vmul.f32 %v3329_v9, %v3783_v36 }
 0x39e   : >> { %2882 = vmatmul.mubr.f32.vlgmr.msra.gmra.mrb[2].mxu1 %v1106_v10 }
 0x39f   : >> { %3163 = vmatpush3.bf16.msra.mxu1 %v3438_v24  ;;  %2955 = vmatprep.mubr.msk.f32.mxu1 %vm3435_vm12, %v3434_v19 }
 0x3a0   : >> { %2953 = vmatprep.subr.mxu1 %v3434_v19 }
 0x3a3   : >> { %2954 = vmatpush3.msra.mxu1 %v820_v15 }
 0x3a4   : >> { %2956 = vmatmul.mubr.msk.f32.vlgmr.msra.gmra.mrb[4].mxu1 %vm614_vm0, %v3708_v31  ;;  %3164 = vmatprep.subr.bf16.mxu1 %v3438_v24 }
 0x3a5   : >> { %v3331_v16 = vpop.eup %3330  ;;  %3165 = vmatpush3.bf16.msra.mxu1 %v3438_v24  ;;  %2964 = vmatprep.mubr.msk.f32.mxu1 %vm3435_vm12, %v3434_v19 }
 0x3a6   : >> { %2962 = vmatprep.subr.mxu1 %v3434_v19  ;;  %v1443_v17 = vmul.f32 %v3331_v16, %v3786_v40 }
 0x3a8   : >> { %2938 = vmatmul.mubr.f32.vlgmr.msra.gmra.mrb[10].mxu0 %v1443_v17 }
 0x3a9   : >> { %3161 = vmatpush3.bf16.msra.mxu0 %v3438_v24  ;;  %2963 = vmatpush3.msra.mxu1 %v825_v18  ;;  %v798_v18 = vld [vmem:[%s3669_s1 + $0x18] sm:$0xff] }
 0x3aa   : >> { %2965 = vmatmul.mubr.msk.f32.vlgmr.msra.gmra.mrb[6].mxu1 %vm614_vm0, %v3699_v28  ;;  %3195 = vmatprep.subr.bf16.mxu1 %v3438_v24  ;;  %v3193_v21 = vpack.c.bf16 %v798_v18, %v3434_v19 }
 0x3ab   : >> { %3196 = vmatpush3.bf16.msra.mxu1 %v3438_v24  ;;  %2944 = vmatprep.subr.mxu0 %v3434_v19 }
 0x3ac   : >> { %2946 = vmatprep.mubr.msk.f32.mxu0 %vm3435_vm12, %v3434_v19  ;;  %3197 = vmatprep.subr.bf16.mxu1 %v3438_v24 }
 0x3ad   : >> { %2945 = vmatpush3.msra.mxu0 %v797_v22  ;;  %3021 = vmatprep.mubr.msk.f32.mxu1 %vm3435_vm12, %v3434_v19 }
 0x3ae   : >> { %2947 = vmatmul.mubr.msk.f32.vlgmr.msra.gmra.mrb[12].mxu0 %vm614_vm0, %v3660_v20  ;;  %3166 = vmatprep.subr.bf16.mxu0 %v3438_v24 }
 0x3af   : >> { %3199 = vmatpush3.bf16.msra.mxu1 %v3198_v23  ;;  %3168 = vmatpush3.bf16.msra.mxu0 %v3762_v63 }
 0x3b0   : >> { %3200 = vmatprep.subr.bf16.mxu1 %v3438_v24  ;;  %3169 = vmatprep.subr.bf16.mxu0 %v3438_v24 }
 0x3b1   : >> { %2999 = vmatprep.mubr.msk.f32.mxu0 %vm3435_vm12, %v3434_v19 }
 0x3b2   : >> { %3022 = vmatmul.mubr.msk.f32.vlgmr.msra.gmra.mrb[8].mxu1 %vm614_vm0, %v3708_v31 }
 0x3b3   : >> { %3201 = vmatpush3.bf16.msra.mxu1 %v3438_v24  ;;  %3032 = vmatprep.mubr.msk.f32.mxu1 %vm3435_vm12, %v3434_v19 }
 0x3b4   : >> { %3202 = vmatprep.subr.bf16.mxu1 %v3438_v24  ;;  %3171 = vmatpush3.bf16.msra.mxu0 %v3766_v1 }
 0x3b5   : >> { %3172 = vmatprep.subr.bf16.mxu0 %v3438_v24 }
 0x3b7   : >> { %3204 = vmatpush3.bf16.msra.mxu1 %v3203_v26 }
 0x3b8   : >> { %3174 = vmatpush3.bf16.msra.mxu0 %v3774_v4  ;;  %3205 = vmatprep.subr.bf16.mxu1 %v3438_v24 }
 0x3b9   : >> { %3175 = vmatprep.subr.bf16.mxu0 %v3438_v24 }
 0x3ba   : >> { %3033 = vmatmul.mubr.msk.f32.vlgmr.msra.gmra.mrb[10].mxu1 %vm614_vm0, %v3699_v28 }
 0x3bb   : >> { %3207 = vmatpush3.bf16.msra.mxu1 %v3762_v63  ;;  %3067 = vmatprep.mubr.msk.f32.mxu1 %vm3435_vm12, %v3434_v19 }
 0x3bc   : >> { %3177 = vmatpush3.bf16.msra.mxu0 %v3791_v45  ;;  %3208 = vmatprep.subr.bf16.mxu1 %v3438_v24 }
 0x3bd   : >> { %3178 = vmatprep.subr.bf16.mxu0 %v3438_v24 }
 0x3bf   : >> { %3210 = vmatpush3.bf16.msra.mxu1 %v3766_v1 }
 0x3c0   : >> { %3180 = vmatpush3.bf16.msra.mxu0 %v3799_v50  ;;  %3211 = vmatprep.subr.bf16.mxu1 %v3438_v24 }
 0x3c1   : >> { %3181 = vmatprep.subr.bf16.mxu0 %v3438_v24 }
 0x3c3   : >> { %3213 = vmatpush3.bf16.msra.mxu1 %v3774_v4 }
 0x3c4   : >> { %3183 = vmatpush3.bf16.msra.mxu0 %v3807_v53  ;;  %3214 = vmatprep.subr.bf16.mxu1 %v3438_v24 }
 0x3c5   : >> { %3184 = vmatprep.subr.bf16.mxu0 %v3438_v24 }
 0x3c7   : >> { %3216 = vmatpush3.bf16.msra.mxu1 %v3791_v45 }
 0x3c8   : >> { %3186 = vmatpush3.bf16.msra.mxu0 %v3812_v56  ;;  %3217 = vmatprep.subr.bf16.mxu1 %v3438_v24 }
 0x3c9   : >> { %3187 = vmatprep.subr.bf16.mxu0 %v3438_v24 }
 0x3cb   : >> { %3219 = vmatpush3.bf16.msra.mxu1 %v3799_v50 }
 0x3cc   : >> { %3189 = vmatpush3.bf16.msra.mxu0 %v3823_v59  ;;  %3220 = vmatprep.subr.bf16.mxu1 %v3438_v24 }
 0x3cd   : >> { %3190 = vmatprep.subr.bf16.mxu0 %v3438_v24 }
 0x3cf   : >> { %3222 = vmatpush3.bf16.msra.mxu1 %v3807_v53 }
 0x3d0   : >> { %3223 = vmatprep.subr.bf16.mxu1 %v3438_v24 }
 0x3d3   : >> { %3225 = vmatpush3.bf16.msra.mxu1 %v3812_v56 }
 0x3d4   : >> { %3226 = vmatprep.subr.bf16.mxu1 %v3438_v24 }
 0x3d7   : >> { %3228 = vmatpush3.bf16.msra.mxu1 %v3823_v59 }
 0x471   : >> { %v1173_v28 = vpop.f32.mrb[2].mxu1 }
 0x472   : >> { %v2883_v31 = vpop.f32.mrb[3].mxu1  ;;  %v1179_v30 = vsel %vm773_vm5, %v1173_v28, 0.0 }
 0x477   : >> { %v1676_v63 = vpop.f32.mrb[4].mxu1 }
 0x478   : >> { %v1680_v1 = vmul.f32 0.35355338, %v1676_v63  ;;  %v2957_v4 = vpop.f32.mrb[5].mxu1 }
 0x47a   : >> { %v1681_v27 = vadd.f32 %v1680_v1, %v3740_v42 }
 0x47b   : >> { %v1510_v29 = vpop.f32.mrb[10].mxu0 }
 0x47c   : >> { %1756 = vmax.xlane.f32.xlu1 %v1681_v27  ;;  %v1516_v32 = vsel %vm3630_vm6, %v1510_v29, 0.0  ;;  %v2939_v33 = vpop.f32.mrb[11].mxu0 }
 0x47d   : >> { %v1517_v35 = vadd.f32 %v1516_v32, %v1179_v30  ;;  %v1748_v36 = vpop.f32.mrb[6].mxu1 }
 0x47e   : >> { %v1752_v37 = vmul.f32 0.35355338, %v1748_v36  ;;  %v2966_v38 = vpop.f32.mrb[7].mxu1 }
 0x480   : >> { %v1753_v39 = vadd.f32 %v1752_v37, %v3749_v49 }
 0x481   : >> { %v1604_v40 = vpop.f32.mrb[12].mxu0 }
 0x482   : >> { %v1608_v41 = vmul.f32 0.35355338, %v1604_v40  ;;  %1758 = vmax.xlane.f32.xlu0 %v1753_v39  ;;  %v2948_v43 = vpop.f32.mrb[13].mxu0 }
 0x484   : >> { %v1609_v44 = vadd.f32 %v1608_v41, %v3731_v34 }
 0x485   : >> { %v2013_v45 = vpop.f32.mrb[8].mxu1 }
 0x486   : >> { %v3023_v46 = vpop.f32.mrb[9].mxu1  ;;  %1754 = vmax.xlane.f32.xlu1 %v1609_v44  ;;  %v2017_v62 = vmul.f32 0.35355338, %v2013_v45 }
 0x488   : >> { %v2018_v5 = vadd.f32 %v2017_v62, %v3740_v42 }
 0x48d   : >> { %v2085_v47 = vpop.f32.mrb[10].mxu1 }
 0x48e   : >> { %v3034_v48 = vpop.f32.mrb[11].mxu1  ;;  %v2089_v2 = vmul.f32 0.35355338, %v2085_v47 }
 0x490   : >> { %v2090_v6 = vadd.f32 %v2089_v2, %v3749_v49 }
 0x509   : >> { %v1757_v50 = vpop.xlane.xlu1 %1756 }
 0x50f   : >> { %v1759_v51 = vpop.xlane.xlu0 %1758 }
 0x510   : >> { %v1760_v52 = vmax.f32 %v1757_v50, %v1759_v51  ;;  %v2198_v50 = vld [vmem:[%s4032_s2] sm:$0xff] (%p786_p11)  ;;  %v2199_v51 = vld [vmem:[%s4032_s2 + $0x8] sm:$0xff] (%p786_p11) }
 0x513   : >> { %v1755_v53 = vpop.xlane.xlu1 %1754 }
 0x514   : >> { %v1761_v54 = vmax.f32 %v1755_v53, %v1760_v52  ;;  %v2200_v52 = vld [vmem:[%s4032_s2 + $0x10] sm:$0xff] (%p786_p11)  ;;  %v3229_v53 = vpack.c.bf16 (%p786_p11), %v2199_v51, %v2198_v50 }
 0x516   : >> { %v1762_v55 = vsub.f32 %v1609_v44, %v1761_v54  ;;  %v1765_v56 = vsub.f32 %v1681_v27, %v1761_v54  ;;  %v1768_v57 = vsub.f32 %v1753_v39, %v1761_v54  ;;  %v2201_v54 = vld [vmem:[%s4032_s2 + $0x18] sm:$0xff] (%p786_p11)  ;;  %3247 = vmatprep.subr.bf16.mxu1 (%p786_p11), %v3229_v53 }
 0x518   : >> { %v1763_v58 = vmul.f32 1.442695, %v1762_v55  ;;  %v1766_v59 = vmul.f32 1.442695, %v1765_v56  ;;  %v1769_v60 = vmul.f32 1.442695, %v1768_v57  ;;  %v3233_v57 = vpack.c.bf16 (%p786_p11), %v2201_v54, %v2200_v52 }
 0x51a   : >> { %3332 = vpow2.f32 %v1763_v58 }
 0x51b   : >> { %3334 = vpow2.f32 %v1766_v59 }
 0x51c   : >> { %3336 = vpow2.f32 %v1769_v60 }
 0x524   : >> { %v3333_v61 = vpop.eup %3332 }
 0x525   : >> { %v3335_v0 = vpop.eup %3334  ;;  %1771 = vadd.xlane.f32.xlu0 %v3333_v61 }
 0x526   : >> { %1773 = vadd.xlane.f32.xlu1 %v3335_v0  ;;  %v3337_v3 = vpop.eup %3336 }
 0x529   : >> { %1776 = vadd.xlane.f32.xlu0 %v3337_v3 }
 0x52a   : >> { %2093 = vmax.xlane.f32.xlu1 %v2018_v5 }
 0x52d   : >> { %2095 = vmax.xlane.f32.xlu0 %v2090_v6 }
 0x5b2   : >> { %v1772_v7 = vpop.xlane.xlu0 %1771 }
 0x5b3   : >> { %v1774_v8 = vpop.xlane.xlu1 %1773 }
 0x5b4   : >> { %v1775_v9 = vadd.f32 %v1774_v8, %v1772_v7 }
 0x5b6   : >> { %v1777_v10 = vpop.xlane.xlu0 %1776 }
 0x5b7   : >> { %v1778_v15 = vadd.f32 %v1777_v10, %v1775_v9  ;;  %v2094_v63 = vpop.xlane.xlu1 %2093 }
 0x5b9   : >> { %3338 = vrcp.f32 %v1778_v15 }
 0x5c3   : >> { %v3339_v16 = vpop.eup %3338 }
 0x5c4   : >> { %v1780_v17 = vmul.f32 %v3339_v16, %v3333_v61 }
 0x5c6   : >> { %3000 = vmatmul.mubr.f32.vlgmr.msra.gmra.mrb[14].mxu0 %v1780_v17 }
 0x5c7   : >> { %3191 = vmatpush3.bf16.msra.mxu0 %v3438_v24  ;;  %3010 = vmatprep.mubr.msk.f32.mxu0 %vm3435_vm12, %v3434_v19  ;;  %v2096_v19 = vpop.xlane.xlu0 %2095 }
 0x5c8   : >> { %3192 = vmatprep.subr.bf16.mxu0 %v3438_v24  ;;  %v2097_v1 = vmax.f32 %v2094_v63, %v2096_v19 }
 0x5cb   : >> { %3194 = vmatpush3.bf16.msra.mxu0 %v3193_v21 }
 0x5cc   : > { %3230 = vmatprep.subr.bf16.mxu0 (%p786_p11), %v3229_v53 }
 0x5ce   : >> { %3011 = vmatmul.mubr.msk.f32.vlgmr.msra.gmra.mrb[16].mxu0 %vm614_vm0, %v3660_v20 }
 0x5cf   : > { %3232 = vmatpush3.bf16.msra.mxu0 (%p786_p11), %v3229_v53 }
 0x5d0   : > { %3234 = vmatprep.subr.bf16.mxu0 (%p786_p11), %v3233_v57 }
 0x5d3   : > { %3236 = vmatpush3.bf16.msra.mxu0 (%p786_p11), %v3233_v57 }
 0x699   : >> { %v1847_v42 = vpop.f32.mrb[14].mxu0 }
 0x69a   : >> { %v1853_v49 = vsel %vm3636_vm9, %v1847_v42, 0.0  ;;  %v3001_v22 = vpop.f32.mrb[15].mxu0 }
 0x69b   : >> { %v1854_v23 = vadd.f32 %v1853_v49, %v1517_v35 }
 0x6a1   : >> { %v1941_v25 = vpop.f32.mrb[16].mxu0 }
 0x6a2   : >> { %v1945_v26 = vmul.f32 0.35355338, %v1941_v25  ;;  %v3012_v28 = vpop.f32.mrb[17].mxu0 }
 0x6a4   : >> { %v1946_v31 = vadd.f32 %v1945_v26, %v3731_v34 }
 0x6a6   : >> { %2091 = vmax.xlane.f32.xlu1 %v1946_v31 }
 0x733   : >> { %v2092_v24 = vpop.xlane.xlu1 %2091 }
 0x734   : >> { %v2098_v4 = vmax.f32 %v2092_v24, %v2097_v1 }
 0x736   : >> { %v2099_v27 = vsub.f32 %v1946_v31, %v2098_v4  ;;  %v2102_v29 = vsub.f32 %v2018_v5, %v2098_v4  ;;  %v2105_v20 = vsub.f32 %v2090_v6, %v2098_v4 }
 0x738   : >> { %v2100_v30 = vmul.f32 1.442695, %v2099_v27  ;;  %v2103_v32 = vmul.f32 1.442695, %v2102_v29  ;;  %v2106_v33 = vmul.f32 1.442695, %v2105_v20 }
 0x73a   : >> { %3340 = vpow2.f32 %v2100_v30 }
 0x73b   : >> { %3342 = vpow2.f32 %v2103_v32 }
 0x73c   : >> { %3344 = vpow2.f32 %v2106_v33 }
 0x744   : >> { %v3341_v35 = vpop.eup %3340 }
 0x745   : >> { %v3343_v36 = vpop.eup %3342  ;;  %2108 = vadd.xlane.f32.xlu0 %v3341_v35 }
 0x746   : >> { %2110 = vadd.xlane.f32.xlu1 %v3343_v36  ;;  %v3345_v34 = vpop.eup %3344 }
 0x749   : >> { %2113 = vadd.xlane.f32.xlu0 %v3345_v34 }
 0x7d2   : >> { %v2109_v37 = vpop.xlane.xlu0 %2108 }
 0x7d3   : >> { %v2111_v38 = vpop.xlane.xlu1 %2110 }
 0x7d4   : >> { %v2112_v39 = vadd.f32 %v2111_v38, %v2109_v37 }
 0x7d6   : >> { %v2114_v40 = vpop.xlane.xlu0 %2113 }
 0x7d7   : >> { %v2115_v41 = vadd.f32 %v2114_v40, %v2112_v39 }
 0x7d9   : >> { %3346 = vrcp.f32 %v2115_v41 }
 0x7e3   : >> { %v3347_v43 = vpop.eup %3346 }
 0x7e4   : >> { %v2117_v44 = vmul.f32 %v3347_v43, %v3341_v35 }
 0x7e6   : >> { %3068 = vmatmul.mubr.f32.vlgmr.msra.gmra.mrb[12].mxu1 %v2117_v44 }
 0x7e7   : > { %3249 = vmatpush3.bf16.msra.mxu1 (%p786_p11), %v3229_v53 }
 0x7e8   : > { %3248 = vmatprep.subr.bf16.mxu1 (%p786_p11), %v3233_v57 }
 0x7eb   : > { %3250 = vmatpush3.bf16.msra.mxu1 (%p786_p11), %v3233_v57 }
 0x8b7   : > { %788 = sbr.rel (!%p786_p11) target bundleno = 254 (0xfe), region = 154 }
 0x8b9   : >> { %v2184_v45 = vpop.f32.mrb[12].mxu1 }
 0x8ba   : >> { %v2190_v46 = vsel %vm3640_vm10, %v2184_v45, 0.0  ;;  %v3069_v47 = vpop.f32.mrb[13].mxu1 }
 0x8bb   : >> { %v2191_v48 = vadd.f32 %v2190_v46, %v1854_v23 }
 0x8bd   : >> { %2193 = vst.msk [vmem:[%s2192_s5] sm:$0xff] %vm614_vm0, %v2191_v48 }
 0x8c4   : > { %v2194_v55 = vld [vmem:[#allocation3] sm:$0xff]  ;;  %v2196_v56 = vld [vmem:[#allocation3 + $0x10] sm:$0xff]  ;;  %v2195_v11 = vld [vmem:[#allocation3 + $0x8] sm:$0xff] }
 0x8c5   : > { %3078 = vmatprep.mubr.msk.f32.mxu0 %vm614_vm0, %v2194_v55  ;;  %3081 = vmatprep.mubr.msk.f32.mxu1 %vm614_vm0, %v2196_v56  ;;  %v2197_v12 = vld [vmem:[#allocation3 + $0x18] sm:$0xff] }
 0x8c6   : > { %3079 = vmatmul.mubr.msk.f32.vlgmr.msra.gmra.mrb[0].mxu0 %vm614_vm0, %v2195_v11  ;;  %3082 = vmatmul.mubr.msk.f32.vlgmr.msra.gmra.mrb[0].mxu1 %vm614_vm0, %v2197_v12 }
 0x999   : > { %v3080_v14 = vpop.f32.mrb[0].mxu0  ;;  %v3083_v58 = vpop.f32.mrb[0].mxu1 }
 0x99a   : > { %v2293_v59 = vadd.f32 %v3080_v14, %v2670_v13  ;;  %v2303_v60 = vadd.f32 %v3083_v58, %v2670_v13  ;;  %v2287_v61 = vpop.f32.mrb[1].mxu0  ;;  %v2297_v62 = vpop.f32.mrb[1].mxu1 }
 0x99b   : > { %v2288_v0 = vadd.f32 %v2670_v13, %v2287_v61  ;;  %v2298_v2 = vadd.f32 %v2670_v13, %v2297_v62 }
 0x99c   : > { %2307 = vst.msk [vmem:[#allocation4 + $0x8] sm:$0xff] %vm614_vm0, %v2293_v59  ;;  %2309 = vst.msk [vmem:[#allocation4 + $0x18] sm:$0xff] %vm614_vm0, %v2303_v60 }
 0x99d   : > { %2306 = vst.msk [vmem:[#allocation4] sm:$0xff] %vm614_vm0, %v2288_v0  ;;  %2308 = vst.msk [vmem:[#allocation4 + $0x10] sm:$0xff] %vm614_vm0, %v2298_v2 }
 0x99e LB: >> { %v3439_v3 = vmov 0.0|0.0   ;;  %vm3440_vm13 = vmmov 0   ;;  %v3441_v5 = vmov 0.0   ;;  %s2676_s26 = sshll.u32 %s3432_s20, 5  ;;  %s4078_s9 = scalar_lea.vmem %s4038_s8, %s3578_s17  ;;  %s3432_s20 = sphi %s3958_s20, %s2315_s20  }
 0x99f   : >> { %3237 = vmatprep.subr.bf16.mxu0 %v3439_v3  ;;  %3092 = vmatprep.mubr.msk.f32.mxu0 %vm3440_vm13, %v3441_v5  ;;  %s2318_s23 = scalar_lea.vmem %s4078_s9, %s2676_s26  ;;  %s2675_s5 = sshll.u32 %s3432_s20, 3 }
 0x9a0   : >> { %v2319_v6 = vld [vmem:[%s2318_s23] sm:$0xff]  ;;  %v2320_v7 = vld [vmem:[%s2318_s23 + $0x8] sm:$0xff]  ;;  %v2321_v8 = vld [vmem:[%s2318_s23 + $0x10] sm:$0xff]  ;;  %s2323_s12 = scalar_lea.vmem [#allocation4], %s2675_s5  ;;  %s2401_s1 = scalar_lea.vmem %s3609_s24, %s2675_s5 }
 0x9a1   : >> { %v3238_v9 = vpack.c.bf16 %v2320_v7, %v2319_v6  ;;  %v2322_v10 = vld [vmem:[%s2318_s23 + $0x18] sm:$0xff]  ;;  %v2402_v49 = vld [vmem:[%s2401_s1] sm:$0xff]  ;;  %s4079_s14 = scalar_lea.vmem [#allocation5], %s3571_s29  ;;  %s2315_s20 = sadd.s32 1, %s3432_s20  }
 0x9a2   : >> { %v3241_v15 = vpack.c.bf16 %v2322_v10, %v2321_v8  ;;  %s2413_s15 = scalar_lea.vmem %s4079_s14, %s2675_s5 [#allocation5]  ;;  %p2312_p12 = scmp.ge.s32.totalorder %s2315_s20, 4  }
 0x9a3   : >> { %3239 = vmatpush3.bf16.msra.mxu0 %v3238_v9  ;;  %s2688_s19 = sshll.u32 (%p2312_p12), %s3531_s25, 9  ;;  %s4080_s27 = sld [smem:[#allocation18_spill]] (%p2312_p12) }
 0x9a4   : >> { %3240 = vmatprep.subr.bf16.mxu0 %v3439_v3  ;;  %v2324_v16 = vld [vmem:[%s2323_s12] sm:$0xff]  ;;  %s4081_s16 = scalar_lea.vmem (%p2312_p12), [#allocation5], %s3571_s29  ;;  %s4082_s18 = sand.u32 (%p2312_p12), 1, %s3416_s22  }
 0x9a5   : > { %s2429_s26 = sshll.u32 (%p2312_p12), %s4081_s16, 4  ;;  %s3989_s20 = scalar_lea.sflag (%p2312_p12), [#allocation6], %s4082_s18  ;;  %s3985_s26 = int_to_ptr.vmem [resolvable:$true] %s2429_s26 }
 0x9a6   : > { %s3354_s24 = scalar_lea.vmem (%p2312_p12), %s3985_s26, 512  ;;  %s3442_s25 = smov (%p2312_p12), [#allocation5]  }
 0x9a7   : >> { %3242 = vmatpush3.bf16.msra.mxu0 %v3241_v15  ;;  %p3355_p13 = scmp.ne.s32.totalorder (%p2312_p12), %s3985_s26, %s3354_s24  ;;  %s3358_s17 = sshll.u32 (%p2312_p12), %s3442_s25, 4  ;;  %s3359_s17 = int_to_ptr.vmem [resolvable:$false] %s3358_s17 }
 0x9a8   : > { %s3360_s21 = scalar_lea.vmem (%p2312_p12), %s3359_s17, 1024  ;;  %p3361_p2 = scmp.lt.s32.totalorder (%p2312_p12), %s3985_s26, %s3359_s17 }
 0x9a9   : > { %s3981_s0 = scalar_lea.hbm (%p2312_p12), %s4080_s27, %s2688_s19  ;;  %p3356_p0 = pnand (%p2312_p12), %p3355_p13, %p3548_p5 }
 0x9aa   : >> { %3093 = vmatmul.mubr.msk.f32.vlgmr.msra.gmra.mrb[0].mxu0 %vm614_vm0, %v2324_v16  ;;  %p3362_p3 = scmp.lt.s32.totalorder (%p2312_p12), %s3360_s21, %s3354_s24 }
 0x9ab   : > { %p3357_p1 = pneg (%p2312_p12), %p3356_p0 }
 0x9ac   : > { %p3363_p4 = por (%p2312_p12), %p3362_p3, %p3361_p2 }
 0x9ae   : > { %p3364_p7 = pnand (%p2312_p12), %p3363_p4, %p3357_p1 }
 0xa7d   : >> { %v2394_v17 = vpop.f32.mrb[0].mxu0 }
 0xa7e   : >> { %v2398_v18 = vmul.f32 0.17677669, %v2394_v17  ;;  %v3094_v21 = vpop.f32.mrb[1].mxu0 }
 0xa80   : >> { %3348 = vtanh.f32 %v2398_v18 }
 0xa8a   : >> { %v3349_v42 = vpop.eup %3348 }
 0xa8b   : >> { %v2400_v22 = vmul.f32 10.0, %v3349_v42 }
 0xa8d   : >> { %v2403_v23 = vadd.f32 %v2402_v49, %v2400_v22 }
 0xa8f   : >> { %2404 = vmax.xlane.f32.xlu0 %v2403_v23 }
 0xb1c   : >> { %v2405_v25 = vpop.xlane.xlu0 %2404 }
 0xb1d   : >> { %v2406_v26 = vsub.f32 %v2403_v23, %v2405_v25 }
 0xb1f   : >> { %v2407_v28 = vmul.f32 1.442695, %v2406_v26 }
 0xb21   : >> { %3350 = vpow2.f32 %v2407_v28 }
 0xb2b   : >> { %v3351_v31 = vpop.eup %3350 }
 0xb2c   : >> { %2409 = vadd.xlane.f32.xlu0 %v3351_v31 }
 0xbb9   : >> { %v2410_v63 = vpop.xlane.xlu0 %2409 }
 0xbba   : >> { %3352 = vrcp.f32 %v2410_v63 }
 0xbc1   : > { %2314 = sbr.rel (!%p2312_p12) target bundleno = 2462 (0x99e), region = 165 }
 0xbc4   : >> { %v3353_v19 = vpop.eup %3352 }
 0xbc5   : >> { %v2412_v1 = vmul.f32 %v3353_v19, %v3351_v31 }
 0xbc7   : >> { %2414 = vst [vmem:[%s2413_s15] sm:$0xff] %v2412_v1 }
 0xbc8   : > { %3367 = shalt.err (!%p3364_p7)
}
 0xbc9   : > { %s3368_s29 = scalar_lea.hbm %s3981_s0, 512  ;;  %s3372_s5 = scalar_lea.hbm %s4080_s27, 1024 }
 0xbca   : > { %p3369_p8 = scmp.ne.s32.totalorder %s3981_s0, %s3368_s29  ;;  %p3373_p11 = scmp.lt.u32.totalorder %s3981_s0, %s4080_s27 }
 0xbcb   : > { %p3374_p12 = scmp.lt.u32.totalorder %s3372_s5, %s3368_s29  ;;  %p3376_p0 = scmp.lt.u32.totalorder %s3368_s29, %s3981_s0 }
 0xbcc   : > { %p3370_p9 = pnand %p3369_p8, %p3548_p5 }
 0xbcd   : > { %p3375_p13 = por %p3374_p12, %p3373_p11 }
 0xbce   : > { %p3371_p10 = pneg %p3370_p9 }
 0xbcf   : > { %p3377_p1 = por %p3376_p0, %p3375_p13 }
 0xbd1   : > { %p3378_p2 = pnand %p3377_p1, %p3371_p10 }
 0xbd3   : > { %3381 = shalt.err (!%p3378_p2)
}
 0xbd4   : > { %s3443_s14 = smov 128   ;;  %s3444_s15 = smov 8  }
 0xbd5   : > { %3251 = dma.vmem_to_hbm [thread:$0]  (%p3548_p5), %s3985_s26, 512, %s3981_s0, %s3989_s20, %s3443_s14, %s3443_s14, %s3444_s15  }
 0xbd6 PF: > { %s4083_s19 = sld [smem:[#allocation10_spill]]  ;;  %s4084_s30 = sld [smem:[#allocation8_spill]] }
 0xbdc   : > { %p3257_p3 = scmp.ge.s32.totalorder %s4083_s19, 2  ;;  %s2444_s16 = sand.u32 1, %s4084_s30  }
 0xbdd   : > { %s2445_s18 = scalar_lea.sflag [#allocation6], %s2444_s16 }
 0xbde   : > { %p3254_p4 = pnand %p3257_p3, %p3552_p6 }
 0xbe0   : > { %3407 = dma.done.wait (!%p3254_p4), %s2445_s18, 512  }
 0xbe1   : > { %3409 = vsyncadd (!%p3254_p4), %s2445_s18, 4294966784  ;;  %s4086_s24 = sld [smem:[#allocation11_spill]]  ;;  %s4087_s25 = sld [smem:[#allocation9_spill]] }
 0xbe2   : > { %s4088_s23 = sld [smem:[#allocation12_spill]]  ;;  %s4089_s21 = smov %s3416_s22 }
 0xbe7   : > { %p22_p7 = scmp.ge.s32.totalorder %s4086_s24, 4   ;;  %s4090_s22 = smov %s4087_s25 }
 0xbe9   :  { %24 = sbr.rel (!%p22_p7) target bundleno = 9 (0x9), region = 176 }
 0xbf0   :  { %2450 = vsyncpa [#allocation6], 1 }
 0xbf1   :  { %2452 = vsyncpa [#allocation6 + $0x1], 1 }

</bundles_post_ra>
